<compile_context>
chip_gen: v5e
topology: v5e:2x2
jax: 0.10.0
libtpu: 0.0.40
codegen_flags: <defaults>
</compile_context>

<pallas_src>
import functools

import jax
import jax.numpy as jnp
from jax.experimental import pallas as pl
from jax.experimental.pallas import tpu as pltpu


def _label_smoothing_kernel(x_ref, tgt_ref, out_ref, *, size, padding_idx,
                            smoothing):
    """One batch tile: analytic smoothed-CE, one lane-dense partial per block."""
    x = x_ref[...].astype(jnp.float32)            # (BN, V) logits, f32 compute
    tgt = tgt_ref[...]                            # (BN, 1) int32 labels
    bn, v = x.shape

    confidence = 1.0 - smoothing
    smooth_val = smoothing / (size - 2)
    # Total true_dist mass of a non-pad row (== 1.0 when v == size).
    c_total = confidence + smooth_val * (size - 2)

    # Numerically stable log-softmax pieces (per row).
    m = jnp.max(x, axis=-1, keepdims=True)
    z = x - m
    lse = jnp.log(jnp.sum(jnp.exp(z), axis=-1, keepdims=True))        # (BN, 1)

    # Single weighted lane-sum replaces the separate z_t / z_sum reductions:
    #   S = sum_c where(c==tgt, conf, sv) * z_c
    col = jax.lax.broadcasted_iota(jnp.int32, (bn, v), 1)
    w = jnp.where(col == tgt, confidence, smooth_val)
    s = jnp.sum(w * z, axis=-1, keepdims=True)                        # (BN, 1)

    # padding_idx is a compile-time constant -> static lane slice, no reduce.
    z_pad = z[:, padding_idx:padding_idx + 1]                         # (BN, 1)

    # loss_n = -sum_c true_dist[n,c] * logp[n,c]  ==  -(S - sv*z_pad - C*lse)
    loss_rows = -(s - smooth_val * z_pad - c_total * lse)
    loss_rows = jnp.where(tgt == padding_idx, 0.0, loss_rows)         # (BN, 1)

    # Lane-dense per-block partial: partial sum at [0, 0] of an (8, 128) tile.
    partial = jnp.sum(loss_rows)
    sub = jax.lax.broadcasted_iota(jnp.int32, (8, 128), 0)
    lane = jax.lax.broadcasted_iota(jnp.int32, (8, 128), 1)
    out_ref[0] = jnp.where((sub == 0) & (lane == 0), partial, 0.0)


def label_smoothing_loss(x, target, *, size, padding_idx, smoothing=0.0,
                         block_n=None):
    """Pallas wrapper. x: (N, size) float logits, target: (N,) int labels."""
    n, v = x.shape
    assert v == size
    x_itemsize = jnp.dtype(x.dtype).itemsize

    # Generation-aware VMEM cap (v5e/v6e: 128 MiB, v7x: 64 MiB per TC).
    try:
        info = pltpu.get_tpu_info()
        vmem_capacity = getattr(info, "vmem_capacity_bytes", 64 * 1024 * 1024)
    except Exception:
        vmem_capacity = 64 * 1024 * 1024          # conservative (v7x) fallback

    if block_n is None:
        # ~2 MiB of logits per block already sits at >=85% of the HBM roofline
        # and leaves room for the (block_n, V) f32 intermediates.
        target_bytes = 2 * 1024 * 1024
        block_n = max(8, target_bytes // (v * x_itemsize))
        block_n = min(block_n, 1024)              # bytes-capped, not row-capped
        block_n = max(8, (block_n // 8) * 8)      # sublane multiple
        block_n = min(block_n, max(8, ((n + 7) // 8) * 8))

    # Pad the batch up to a multiple of block_n with masked rows
    # (target = padding_idx => zero loss); the mean still divides by true n.
    n_pad = pl.cdiv(n, block_n) * block_n
    if n_pad != n:
        x = jnp.pad(x, ((0, n_pad - n), (0, 0)))
        target = jnp.pad(target, (0, n_pad - n), constant_values=padding_idx)
    tgt = target.reshape(n_pad, 1).astype(jnp.int32)
    num_blocks = n_pad // block_n

    # Scoped VMEM: double-buffered logits + ~4 full-width f32 intermediates
    # (upcast/z, exp(z), weight/iota, products) + targets + slack.
    needed = (2 * block_n * v * x_itemsize        # pipelined input tiles
              + 4 * block_n * v * 4               # f32 intermediates
              + 4 * block_n * 4                   # targets / per-row vectors
              + (1 << 16))
    vmem_limit = max(needed, 32 << 20)
    vmem_limit = min(vmem_limit, int(vmem_capacity * 0.85))

    kernel = functools.partial(
        _label_smoothing_kernel,
        size=size, padding_idx=padding_idx, smoothing=smoothing)

    partials = pl.pallas_call(
        kernel,
        out_shape=jax.ShapeDtypeStruct((num_blocks, 8, 128), jnp.float32),
        grid_spec=pltpu.PrefetchScalarGridSpec(
            num_scalar_prefetch=0,
            grid=(num_blocks,),
            in_specs=[
                pl.BlockSpec((block_n, v), lambda i: (i, 0)),   # logits tile
                pl.BlockSpec((block_n, 1), lambda i: (i, 0)),   # target tile
            ],
            # Each step owns its own lane-dense (8,128) output tile.
            out_specs=pl.BlockSpec((1, 8, 128), lambda i: (i, 0, 0)),
        ),
        compiler_params=pltpu.CompilerParams(
            dimension_semantics=("parallel",),    # independent blocks -> megacore
            vmem_limit_bytes=vmem_limit),
    )(x, tgt)

    # reduction='mean' over the *true* batch (pad rows contribute 0).
    return jnp.sum(partials) / n


def _reference_loss(x, target, size, padding_idx, smoothing):
    """Pure-JAX mirror of the PyTorch forward, for verification."""
    n, v = x.shape
    confidence = 1.0 - smoothing
    td = jnp.full((n, v), smoothing / (size - 2), jnp.float32)
    td = td.at[jnp.arange(n), target].set(confidence)
    td = td.at[:, padding_idx].set(0.0)
    td = jnp.where((target == padding_idx)[:, None], 0.0, td)
    logp = jax.nn.log_softmax(x.astype(jnp.float32), axis=-1)
    return jnp.mean(-jnp.sum(td * logp, axis=-1))


if __name__ == "__main__":
    SIZE = 512         # vocab / class count (module's `size`), lane-friendly
    PADDING_IDX = 0
    SMOOTHING = 0.1
    N = 200            # flattened tokens; not a multiple of the tile

    key = jax.random.PRNGKey(0)
    kx, kt = jax.random.split(key)
    x = jax.random.normal(kx, (N, SIZE), dtype=jnp.float32)
    target = jax.random.randint(kt, (N,), 0, SIZE, dtype=jnp.int32)
    # make sure at least one padding target exercises the row-zeroing path
    target = target.at[3].set(PADDING_IDX)

    ref = _reference_loss(x, target, SIZE, PADDING_IDX, SMOOTHING)

    # f32 path, auto block size (single-block grid)
    loss = label_smoothing_loss(x, target, size=SIZE, padding_idx=PADDING_IDX,
                                smoothing=SMOOTHING)
    loss = jax.block_until_ready(loss)
    assert jnp.allclose(loss, ref, rtol=1e-5, atol=1e-5), (loss, ref)

    # f32 path, forced small block (multi-block grid + padding + parallel
    # per-block partial outputs)
    loss_mb = label_smoothing_loss(x, target, size=SIZE,
                                   padding_idx=PADDING_IDX,
                                   smoothing=SMOOTHING, block_n=64)
    loss_mb = jax.block_until_ready(loss_mb)
    assert jnp.allclose(loss_mb, ref, rtol=1e-5, atol=1e-5), (loss_mb, ref)

    # bf16 logits path (halves HBM traffic; compute stays f32 in-kernel)
    x_bf16 = x.astype(jnp.bfloat16)
    loss_bf16 = label_smoothing_loss(x_bf16, target, size=SIZE,
                                     padding_idx=PADDING_IDX,
                                     smoothing=SMOOTHING)
    loss_bf16 = jax.block_until_ready(loss_bf16)
    ref_bf16 = _reference_loss(x_bf16.astype(jnp.float32), target, SIZE,
                               PADDING_IDX, SMOOTHING)
    assert jnp.allclose(loss_bf16, ref_bf16, rtol=1e-4, atol=1e-4), (
        loss_bf16, ref_bf16)

    print("KERNEL_OK")
</pallas_src>

<mosaic_0001>
module attributes {stable_mosaic.version = 11 : i64} {
  func.func @_label_smoothing_kernel(%arg0: i32, %arg1: memref<200x512xf32, #tpu.memory_space<vmem>>, %arg2: memref<200x1xi32, #tpu.memory_space<vmem>>, %arg3: memref<1x8x128xf32, #tpu.memory_space<vmem>>) attributes {dimension_semantics = [#tpu.dimension_semantics<parallel>], iteration_bounds = array<i64: 1>, scalar_prefetch = 0 : i64, scratch_operands = 0 : i64, tpu.core_type = #tpu.core_type<tc>, window_params = [{transform_indices = @transform_0, window_bounds = array<i64: 200, 512>}, {transform_indices = @transform_1, window_bounds = array<i64: 200, 1>}, {transform_indices = @transform_2, window_bounds = array<i64: 1, 8, 128>}]} {
    %c0 = arith.constant 0 : index
    %c0_0 = arith.constant 0 : index
    %0 = vector.load %arg1[%c0, %c0_0] : memref<200x512xf32, #tpu.memory_space<vmem>>, vector<200x512xf32>
    %c0_1 = arith.constant 0 : index
    %c0_2 = arith.constant 0 : index
    %1 = vector.load %arg2[%c0_1, %c0_2] : memref<200x1xi32, #tpu.memory_space<vmem>>, vector<200x1xi32>
    %cst = arith.constant dense<0xFF800000> : vector<200xf32>
    %2 = vector.multi_reduction <maximumf>, %0, %cst [1] : vector<200x512xf32> to vector<200xf32>
    %3 = vector.shape_cast %2 : vector<200xf32> to vector<200x1xf32>
    %4 = vector.broadcast %3 : vector<200x1xf32> to vector<200x512xf32>
    %5 = arith.subf %0, %4 : vector<200x512xf32>
    %6 = math.exp %5 : vector<200x512xf32>
    %cst_3 = arith.constant dense<0.000000e+00> : vector<200xf32>
    %7 = vector.multi_reduction <add>, %6, %cst_3 [1] : vector<200x512xf32> to vector<200xf32>
    %8 = vector.shape_cast %7 : vector<200xf32> to vector<200x1xf32>
    %9 = math.log %8 : vector<200x1xf32>
    %10 = tpu.iota {dimensions = array<i32: 1>} : vector<200x512xi32>
    %11 = vector.broadcast %1 : vector<200x1xi32> to vector<200x512xi32>
    %12 = arith.cmpi eq, %10, %11 : vector<200x512xi32>
    %cst_4 = arith.constant 0.899999976 : f32
    %cst_5 = arith.constant 1.96078428E-4 : f32
    %13 = vector.broadcast %cst_4 : f32 to vector<200x512xf32>
    %14 = vector.broadcast %cst_5 : f32 to vector<200x512xf32>
    %15 = arith.select %12, %13, %14 : vector<200x512xi1>, vector<200x512xf32>
    %16 = arith.mulf %15, %5 : vector<200x512xf32>
    %cst_6 = arith.constant dense<0.000000e+00> : vector<200xf32>
    %17 = vector.multi_reduction <add>, %16, %cst_6 [1] : vector<200x512xf32> to vector<200xf32>
    %18 = vector.shape_cast %17 : vector<200xf32> to vector<200x1xf32>
    %19 = vector.extract_strided_slice %5 {offsets = [0, 0], sizes = [200, 1], strides = [1, 1]} : vector<200x512xf32> to vector<200x1xf32>
    %cst_7 = arith.constant 1.96078428E-4 : f32
    %20 = vector.broadcast %cst_7 : f32 to vector<200x1xf32>
    %21 = arith.mulf %20, %19 : vector<200x1xf32>
    %22 = arith.subf %18, %21 : vector<200x1xf32>
    %cst_8 = arith.constant 1.000000e+00 : f32
    %23 = vector.broadcast %cst_8 : f32 to vector<200x1xf32>
    %24 = arith.mulf %23, %9 : vector<200x1xf32>
    %25 = arith.subf %22, %24 : vector<200x1xf32>
    %cst_9 = arith.constant 0.000000e+00 : f32
    %26 = vector.broadcast %cst_9 : f32 to vector<200x1xf32>
    %27 = arith.subf %26, %25 : vector<200x1xf32>
    %c0_i32 = arith.constant 0 : i32
    %28 = vector.broadcast %c0_i32 : i32 to vector<200x1xi32>
    %29 = arith.cmpi eq, %1, %28 : vector<200x1xi32>
    %cst_10 = arith.constant 0.000000e+00 : f32
    %30 = vector.broadcast %cst_10 : f32 to vector<200x1xf32>
    %31 = arith.select %29, %30, %27 : vector<200x1xi1>, vector<200x1xf32>
    %32 = vector.shape_cast %31 : vector<200x1xf32> to vector<1x200x1xf32>
    %cst_11 = arith.constant dense<0.000000e+00> : vector<1xf32>
    %33 = vector.multi_reduction <add>, %32, %cst_11 [1, 2] : vector<1x200x1xf32> to vector<1xf32>
    %34 = vector.shape_cast %33 : vector<1xf32> to vector<1x1x1xf32>
    %35 = vector.extract %34[0, 0, 0] : f32 from vector<1x1x1xf32>
    %36 = tpu.iota {dimensions = array<i32: 0>} : vector<8x128xi32>
    %37 = tpu.iota {dimensions = array<i32: 1>} : vector<8x128xi32>
    %c0_i32_12 = arith.constant 0 : i32
    %38 = vector.broadcast %c0_i32_12 : i32 to vector<8x128xi32>
    %39 = arith.cmpi eq, %36, %38 : vector<8x128xi32>
    %c0_i32_13 = arith.constant 0 : i32
    %40 = vector.broadcast %c0_i32_13 : i32 to vector<8x128xi32>
    %41 = arith.cmpi eq, %37, %40 : vector<8x128xi32>
    %42 = arith.andi %39, %41 : vector<8x128xi1>
    %cst_14 = arith.constant 0.000000e+00 : f32
    %43 = vector.broadcast %35 : f32 to vector<8x128xf32>
    %44 = vector.broadcast %cst_14 : f32 to vector<8x128xf32>
    %45 = arith.select %42, %43, %44 : vector<8x128xi1>, vector<8x128xf32>
    %c0_15 = arith.constant 0 : index
    %c0_16 = arith.constant 0 : index
    %c0_17 = arith.constant 0 : index
    %46 = vector.load %arg3[%c0_15, %c0_16, %c0_17] : memref<1x8x128xf32, #tpu.memory_space<vmem>>, vector<1x8x128xf32>
    %47 = vector.shape_cast %46 : vector<1x8x128xf32> to vector<8x128xf32>
    %48 = vector.shape_cast %45 : vector<8x128xf32> to vector<1x8x128xf32>
    tpu.vector_store %arg3[%c0_15, %c0_16, %c0_17], %48 {strides = array<i32>} : memref<1x8x128xf32, #tpu.memory_space<vmem>>, vector<1x8x128xf32>,
    return
  }
  func.func @transform_0(%arg0: i32) -> (i32, i32) {
    %c0_i32 = arith.constant 0 : i32
    %c0_i32_0 = arith.constant 0 : i32
    return %arg0, %c0_i32 : i32, i32
  }
  func.func @transform_1(%arg0: i32) -> (i32, i32) {
    %c0_i32 = arith.constant 0 : i32
    %c0_i32_0 = arith.constant 0 : i32
    return %arg0, %c0_i32 : i32, i32
  }
  func.func @transform_2(%arg0: i32) -> (i32, i32, i32) {
    %c0_i32 = arith.constant 0 : i32
    %c0_i32_0 = arith.constant 0 : i32
    %c0_i32_1 = arith.constant 0 : i32
    return %arg0, %c0_i32, %c0_i32_0 : i32, i32, i32
  }
}

</mosaic_0001>

<bundles_post_ra>
// kernel: tpu_custom_call.1
= control target key start
LH: loop header
LB: loop body
LE: loop exit
PB: predicated region body
PF: predicated region fallthrough
CT: control target
= control target key end

     0   :  { %7 = vsyncpa [#allocation3], 0  ;;  %s3366_s0 = inlined_call_operand.hbm [shape: f32[200,512], index: 0, kind: input, shape index: {}]   ;;  %s3367_s1 = inlined_call_operand.vmem [shape: s32[200,1], index: 1, kind: input, shape index: {}]   ;;  %s3368_s2 = inlined_call_operand.hbm [shape: f32[1,8,128], index: 2, kind: output, shape index: {}]  }
   0x1   :  { %8 = vsyncpa [#allocation4], 0  ;;  %s13_s11 = sshll.u32 %s3366_s0, 4  ;;  %s1834_s12 = smov [#allocation2]   ;;  %s14_s11 = int_to_ptr.hbm [resolvable:$true] %s13_s11 }
   0x2   :  { %s15_s13 = sshll.u32 %s1834_s12, 4  ;;  %s1835_s14 = smov 512   ;;  %s16_s13 = int_to_ptr.vmem [resolvable:$true] %s15_s13 }
   0x3   :  { %s1836_s15 = smov 32  }
   0x4   :  { %21 = dma.hbm_to_vmem [thread:$0]  %s14_s11, 12800, %s16_s13, [#allocation3], %s1835_s14, %s1835_s14, %s1836_s15  }
   0x5   :  { %1830 = dma.done.wait [#allocation3], 12800  }
   0x6   :  { %1831 = vsyncadd [#allocation3], 4294954496  ;;  %v1858_v0 = vld [vmem:[#allocation2 + $0x80] sm:$0xff]  ;;  %v1860_v1 = vld [vmem:[#allocation2 + $0x88] sm:$0xff]  ;;  %s1482_s3 = sshll.u32 %s3368_s2, 4  ;;  %s1483_s3 = int_to_ptr.hbm [resolvable:$true] %s1482_s3 }
   0x7   :  { %v1862_v2 = vld [vmem:[#allocation2 + $0x90] sm:$0xff]  ;;  %v173_v3 = vmax.f32 %v1858_v0, %v1860_v1  ;;  %v1866_v4 = vld [vmem:[#allocation2 + $0x40] sm:$0xff]  ;;  %v1868_v5 = vld [vmem:[#allocation2 + $0x48] sm:$0xff] }
   0x8   :  { %v1870_v6 = vld [vmem:[#allocation2 + $0x98] sm:$0xff]  ;;  %v1872_v7 = vld [vmem:[#allocation2 + $0x50] sm:$0xff]  ;;  %v163_v8 = vmax.f32 %v1866_v4, %v1868_v5  ;;  %v1876_v9 = vld [vmem:[#allocation2] sm:$0xff] }
   0x9   :  { %v174_v10 = vmax.f32 %v173_v3, %v1862_v2  ;;  %v1879_v11 = vld [vmem:[#allocation2 + $0x58] sm:$0xff]  ;;  %v1881_v12 = vld [vmem:[#allocation2 + $0x8] sm:$0xff]  ;;  %v1883_v13 = vld [vmem:[#allocation2 + $0x10] sm:$0xff] }
   0xa   :  { %v164_v14 = vmax.f32 %v163_v8, %v1872_v7  ;;  %v153_v15 = vmax.f32 %v1876_v9, %v1881_v12  ;;  %v1888_v16 = vld [vmem:[#allocation2 + $0xa0] sm:$0xff]  ;;  %v1890_v17 = vld [vmem:[#allocation2 + $0xa8] sm:$0xff]  ;;  %v1892_v18 = vld [vmem:[#allocation2 + $0xb0] sm:$0xff] }
   0xb   :  { %v175_v19 = vmax.f32 %v174_v10, %v1870_v6  ;;  %v1895_v20 = vld [vmem:[#allocation2 + $0x18] sm:$0xff]  ;;  %v178_v21 = vmax.f32 %v1888_v16, %v1890_v17  ;;  %v1899_v22 = vld [vmem:[#allocation2 + $0x60] sm:$0xff]  ;;  %v1901_v23 = vld [vmem:[#allocation2 + $0x68] sm:$0xff] }
   0xc   :  { %v165_v24 = vmax.f32 %v164_v14, %v1879_v11  ;;  %v154_v25 = vmax.f32 %v153_v15, %v1883_v13  ;;  %v1905_v26 = vld [vmem:[#allocation2 + $0x70] sm:$0xff]  ;;  %v168_v27 = vmax.f32 %v1899_v22, %v1901_v23  ;;  %v1909_v28 = vld [vmem:[#allocation2 + $0x20] sm:$0xff]  ;;  %v1912_v30 = vld [vmem:[#allocation2 + $0x28] sm:$0xff] }
   0xd   :  { %176 = vmax.xlane.f32.xlu2 %v175_v19  ;;  %v179_v29 = vmax.f32 %v178_v21, %v1892_v18  ;;  %v1914_v31 = vld [vmem:[#allocation2 + $0x30] sm:$0xff]  ;;  %v1917_v33 = vld [vmem:[#allocation2 + $0xb8] sm:$0xff]  ;;  %v158_v35 = vmax.f32 %v1909_v28, %v1912_v30  ;;  %v1922_v36 = vld [vmem:[#allocation2 + $0x100] sm:$0xff] }
   0xe   :  { %166 = vmax.xlane.f32.xlu1 %v165_v24  ;;  %v155_v32 = vmax.f32 %v154_v25, %v1895_v20  ;;  %v169_v34 = vmax.f32 %v168_v27, %v1905_v26  ;;  %v1924_v37 = vld [vmem:[#allocation2 + $0x108] sm:$0xff]  ;;  %v1926_v38 = vld [vmem:[#allocation2 + $0x78] sm:$0xff]  ;;  %v1928_v39 = vld [vmem:[#allocation2 + $0xe0] sm:$0xff] }
   0xf   :  { %v1930_v40 = vld [vmem:[#allocation2 + $0xe8] sm:$0xff]  ;;  %v159_v41 = vmax.f32 %v158_v35, %v1914_v31  ;;  %v180_v42 = vmax.f32 %v179_v29, %v1917_v33  ;;  %v1934_v43 = vld [vmem:[#allocation2 + $0x38] sm:$0xff]  ;;  %v193_v44 = vmax.f32 %v1922_v36, %v1924_v37  ;;  %v1938_v45 = vld [vmem:[#allocation2 + $0xc0] sm:$0xff] }
  0x10   :  { %156 = vmax.xlane.f32.xlu0 %v155_v32  ;;  %v1940_v46 = vld [vmem:[#allocation2 + $0xc8] sm:$0xff]  ;;  %v170_v47 = vmax.f32 %v169_v34, %v1926_v38  ;;  %v1943_v48 = vld [vmem:[#allocation2 + $0x110] sm:$0xff]  ;;  %v188_v49 = vmax.f32 %v1928_v39, %v1930_v40  ;;  %v1955_v55 = vld [vmem:[#allocation2 + $0x118] sm:$0xff] }
  0x11   :  { %v1947_v50 = vld [vmem:[#allocation2 + $0xf0] sm:$0xff]  ;;  %v160_v51 = vmax.f32 %v159_v41, %v1934_v43  ;;  %v183_v52 = vmax.f32 %v1938_v45, %v1940_v46  ;;  %v194_v53 = vmax.f32 %v193_v44, %v1943_v48  ;;  %v1958_v57 = vld [vmem:[#allocation2 + $0x160] sm:$0xff]  ;;  %v1960_v58 = vld [vmem:[#allocation2 + $0x168] sm:$0xff] }
  0x12   :  { %v1953_v54 = vld [vmem:[#allocation2 + $0xd0] sm:$0xff]  ;;  %v189_v56 = vmax.f32 %v188_v49, %v1947_v50  ;;  %v1962_v59 = vld [vmem:[#allocation2 + $0xf8] sm:$0xff]  ;;  %v1964_v60 = vld [vmem:[#allocation2 + $0x140] sm:$0xff]  ;;  %v208_v8 = vmax.f32 %v1958_v57, %v1960_v58 }
  0x13   :  { %3491 = vst [vmem:[#allocation8_spill] sm:$0xff] %v1964_v60  ;;  %v1966_v61 = vld [vmem:[#allocation2 + $0x148] sm:$0xff]  ;;  %v184_v62 = vmax.f32 %v183_v52, %v1953_v54  ;;  %v195_v63 = vmax.f32 %v194_v53, %v1955_v55  ;;  %v1970_v3 = vld [vmem:[#allocation2 + $0xd8] sm:$0xff]  ;;  %v1974_v10 = vld [vmem:[#allocation2 + $0x120] sm:$0xff] }
  0x14   :  { %3492 = vst [vmem:[#allocation9_spill] sm:$0xff] %v1966_v61  ;;  %v1976_v14 = vld [vmem:[#allocation2 + $0x128] sm:$0xff]  ;;  %v190_v15 = vmax.f32 %v189_v56, %v1962_v59  ;;  %v1979_v19 = vld [vmem:[#allocation2 + $0x170] sm:$0xff]  ;;  %v203_v21 = vmax.f32 %v1964_v60, %v1966_v61  ;;  %v1991_v34 = vld [vmem:[#allocation2 + $0x178] sm:$0xff] }
  0x15   :  { %181 = vmax.xlane.f32.xlu2 %v180_v42  ;;  %v1983_v24 = vld [vmem:[#allocation2 + $0x150] sm:$0xff]  ;;  %v185_v25 = vmax.f32 %v184_v62, %v1970_v3  ;;  %v198_v27 = vmax.f32 %v1974_v10, %v1976_v14  ;;  %v209_v29 = vmax.f32 %v208_v8, %v1979_v19  ;;  %v1994_v41 = vld [vmem:[#allocation2 + $0x1c0] sm:$0xff]  ;;  %v1996_v42 = vld [vmem:[#allocation2 + $0x1c8] sm:$0xff] }
  0x16   :  { %171 = vmax.xlane.f32.xlu1 %v170_v47  ;;  %3493 = vst [vmem:[#allocation10_spill] sm:$0xff] %v1983_v24  ;;  %v1989_v32 = vld [vmem:[#allocation2 + $0x130] sm:$0xff]  ;;  %v204_v35 = vmax.f32 %v203_v21, %v1983_v24  ;;  %v1998_v44 = vld [vmem:[#allocation2 + $0x158] sm:$0xff]  ;;  %v2000_v47 = vld [vmem:[#allocation2 + $0x1a0] sm:$0xff]  ;;  %v223_v56 = vmax.f32 %v1994_v41, %v1996_v42 }
  0x17   :  { %3494 = vst [vmem:[#allocation11_spill] sm:$0xff] %v1994_v41  ;;  %v2002_v49 = vld [vmem:[#allocation2 + $0x1a8] sm:$0xff]  ;;  %v210_v52 = vmax.f32 %v209_v29, %v1991_v34  ;;  %v2006_v53 = vld [vmem:[#allocation2 + $0x138] sm:$0xff]  ;;  %v2010_v62 = vld [vmem:[#allocation2 + $0x180] sm:$0xff] }
  0x18   :  { %161 = vmax.xlane.f32.xlu0 %v160_v51  ;;  %3495 = vst [vmem:[#allocation12_spill] sm:$0xff] %v1996_v42  ;;  %v199_v51 = vmax.f32 %v198_v27, %v1989_v32  ;;  %v205_v8 = vmax.f32 %v204_v35, %v1998_v44  ;;  %v218_v21 = vmax.f32 %v2000_v47, %v2002_v49  ;;  %v2025_v41 = vld [vmem:[#allocation2 + $0x190] sm:$0xff]  ;;  %v2027_v24 = vld [vmem:[#allocation2 + $0x1d8] sm:$0xff]  ;;  %v2038_v61 = vld [vmem:[#allocation2 + $0x208] sm:$0xff] }
  0x19   :  { %3496 = vst [vmem:[#allocation13_spill] sm:$0xff] %v1998_v44  ;;  %v2030_v44 = vld [vmem:[#allocation2 + $0x220] sm:$0xff]  ;;  %v2051_v60 = vld [vmem:[#allocation2 + $0x230] sm:$0xff] }
  0x1a   :  { %3497 = vst [vmem:[#allocation14_spill] sm:$0xff] %v2000_v47  ;;  %v200_v27 = vmax.f32 %v199_v51, %v2006_v53  ;;  %v2034_v47 = vld [vmem:[#allocation2 + $0x1b8] sm:$0xff]  ;;  %v2036_v51 = vld [vmem:[#allocation2 + $0x200] sm:$0xff] }
  0x1b   :  { %3498 = vst [vmem:[#allocation15_spill] sm:$0xff] %v2002_v49  ;;  %v2032_v49 = vld [vmem:[#allocation2 + $0x228] sm:$0xff] }
  0x1c   :  { %3499 = vst [vmem:[#allocation16_spill] sm:$0xff] %v2010_v62 }
  0x1d   :  { %196 = vmax.xlane.f32.xlu2 %v195_v63  ;;  %v2012_v63 = vld [vmem:[#allocation2 + $0x188] sm:$0xff]  ;;  %3503 = vst [vmem:[#allocation20_spill] sm:$0xff] %v2025_v41 }
  0x1e   :  { %191 = vmax.xlane.f32.xlu1 %v190_v15  ;;  %3500 = vst [vmem:[#allocation17_spill] sm:$0xff] %v2012_v63  ;;  %v2015_v15 = vld [vmem:[#allocation2 + $0x1d0] sm:$0xff]  ;;  %v213_v29 = vmax.f32 %v2010_v62, %v2012_v63  ;;  %v2048_v63 = vld [vmem:[#allocation2 + $0x1e8] sm:$0xff]  ;;  %v1837_v62 = vmov 0  }
  0x1f   :  { %3501 = vst [vmem:[#allocation18_spill] sm:$0xff] %v2015_v15  ;;  %v224_v42 = vmax.f32 %v223_v56, %v2015_v15  ;;  %1500 = vset.pattern.permute.xlu1 %v1837_v62  ;;  %1501 = vset.pattern.permute.xlu2 %v1837_v62 }
  0x20   :  { %186 = vmax.xlane.f32.xlu0 %v185_v25  ;;  %v2019_v25 = vld [vmem:[#allocation2 + $0x1b0] sm:$0xff]  ;;  %3504 = vst [vmem:[#allocation21_spill] sm:$0xff] %v2027_v24 }
  0x21   :  { %3502 = vst [vmem:[#allocation19_spill] sm:$0xff] %v2019_v25  ;;  %v219_v35 = vmax.f32 %v218_v21, %v2019_v25  ;;  %v225_v56 = vmax.f32 %v224_v42, %v2027_v24  ;;  %v238_v21 = vmax.f32 %v2030_v44, %v2032_v49  ;;  %v2046_v25 = vld [vmem:[#allocation2 + $0x1e0] sm:$0xff]  ;;  %1502 = vset.pattern.permute.xlu0 %v1837_v62  ;;  %v2055_v42 = vld [vmem:[#allocation2 + $0x210] sm:$0xff]  ;;  %v2068_v62 = vld [vmem:[#allocation2 + $0x288] sm:$0xff] }
  0x22   :  { %3505 = vst [vmem:[#allocation22_spill] sm:$0xff] %v2030_v44  ;;  %v2066_v24 = vld [vmem:[#allocation2 + $0x280] sm:$0xff] }
  0x23   :  { %3506 = vst [vmem:[#allocation23_spill] sm:$0xff] %v2032_v49  ;;  %v220_v15 = vmax.f32 %v219_v35, %v2034_v47  ;;  %v228_v49 = vmax.f32 %v2046_v25, %v2048_v63  ;;  %v239_v44 = vmax.f32 %v238_v21, %v2051_v60  ;;  %v2063_v35 = vld [vmem:[#allocation2 + $0x238] sm:$0xff] }
  0x24   :  { %3507 = vst [vmem:[#allocation24_spill] sm:$0xff] %v2034_v47 }
  0x25   :  { %211 = vmax.xlane.f32.xlu2 %v210_v52  ;;  %3508 = vst [vmem:[#allocation25_spill] sm:$0xff] %v2036_v51  ;;  %v214_v52 = vmax.f32 %v213_v29, %v2025_v41  ;;  %v2061_v41 = vld [vmem:[#allocation2 + $0x1f0] sm:$0xff]  ;;  %v240_v21 = vmax.f32 %v239_v44, %v2063_v35 }
  0x26   :  { %206 = vmax.xlane.f32.xlu1 %v205_v8  ;;  %3509 = vst [vmem:[#allocation26_spill] sm:$0xff] %v2038_v61  ;;  %v2042_v8 = vld [vmem:[#allocation2 + $0x198] sm:$0xff] }
  0x27   :  { %3510 = vst [vmem:[#allocation27_spill] sm:$0xff] %v2042_v8  ;;  %v215_v29 = vmax.f32 %v214_v52, %v2042_v8  ;;  %v2072_v52 = vld [vmem:[#allocation2 + $0x260] sm:$0xff]  ;;  %v2091_v8 = vld [vmem:[#allocation2 + $0x270] sm:$0xff] }
  0x28   :  { %201 = vmax.xlane.f32.xlu0 %v200_v27  ;;  %3511 = vst [vmem:[#allocation28_spill] sm:$0xff] %v2046_v25  ;;  %v233_v27 = vmax.f32 %v2036_v51, %v2038_v61  ;;  %v2070_v61 = vld [vmem:[#allocation2 + $0x218] sm:$0xff]  ;;  %v2074_v51 = vld [vmem:[#allocation2 + $0x268] sm:$0xff] }
  0x29   :  { %3512 = vst [vmem:[#allocation29_spill] sm:$0xff] %v2048_v63  ;;  %v2084_v63 = vld [vmem:[#allocation2 + $0x248] sm:$0xff] }
  0x2a   :  { %3513 = vst [vmem:[#allocation30_spill] sm:$0xff] %v2051_v60  ;;  %v234_v47 = vmax.f32 %v233_v27, %v2055_v42  ;;  %v253_v27 = vmax.f32 %v2066_v24, %v2068_v62  ;;  %v2087_v60 = vld [vmem:[#allocation2 + $0x290] sm:$0xff] }
  0x2b   :  { %3514 = vst [vmem:[#allocation31_spill] sm:$0xff] %v2055_v42  ;;  %v2082_v42 = vld [vmem:[#allocation2 + $0x240] sm:$0xff] }
  0x2c   :  { %3515 = vst [vmem:[#allocation32_spill] sm:$0xff] %v2061_v41  ;;  %v235_v25 = vmax.f32 %v234_v47, %v2070_v61 }
  0x2d   :  { %226 = vmax.xlane.f32.xlu2 %v225_v56  ;;  %3516 = vst [vmem:[#allocation33_spill] sm:$0xff] %v2063_v35  ;;  %v229_v56 = vmax.f32 %v228_v49, %v2061_v41  ;;  %v243_v49 = vmax.f32 %v2082_v42, %v2084_v63  ;;  %v2099_v41 = vld [vmem:[#allocation2 + $0x298] sm:$0xff]  ;;  %v2127_v35 = vld [vmem:[#allocation2 + $0x2d0] sm:$0xff] }
  0x2e   :  { %221 = vmax.xlane.f32.xlu1 %v220_v15  ;;  %3517 = vst [vmem:[#allocation34_spill] sm:$0xff] %v2066_v24  ;;  %v2078_v15 = vld [vmem:[#allocation2 + $0x1f8] sm:$0xff]  ;;  %v2097_v24 = vld [vmem:[#allocation2 + $0x250] sm:$0xff] }
  0x2f   :  { %3518 = vst [vmem:[#allocation35_spill] sm:$0xff] %v2068_v62  ;;  %v230_v44 = vmax.f32 %v229_v56, %v2078_v15  ;;  %v254_v62 = vmax.f32 %v253_v27, %v2087_v60  ;;  %v2108_v56 = vld [vmem:[#allocation2 + $0x2c0] sm:$0xff] }
  0x30   :  { %3519 = vst [vmem:[#allocation36_spill] sm:$0xff] %v2070_v61  ;;  %216 = vmax.xlane.f32.xlu0 %v215_v29  ;;  %v248_v29 = vmax.f32 %v2072_v52, %v2074_v51  ;;  %v2102_v61 = vld [vmem:[#allocation2 + $0x2e0] sm:$0xff] }
  0x31   :  { %3520 = vst [vmem:[#allocation37_spill] sm:$0xff] %v2072_v52  ;;  %v2106_v52 = vld [vmem:[#allocation2 + $0x278] sm:$0xff]  ;;  %v255_v27 = vmax.f32 %v254_v62, %v2099_v41 }
  0x32   :  { %3521 = vst [vmem:[#allocation38_spill] sm:$0xff] %v2074_v51  ;;  %v249_v47 = vmax.f32 %v248_v29, %v2091_v8  ;;  %v2104_v51 = vld [vmem:[#allocation2 + $0x2e8] sm:$0xff] }
  0x33   :  { %3522 = vst [vmem:[#allocation39_spill] sm:$0xff] %v2078_v15  ;;  %v2110_v15 = vld [vmem:[#allocation2 + $0x2c8] sm:$0xff]  ;;  %v268_v29 = vmax.f32 %v2102_v61, %v2104_v51 }
  0x34   :  { %3523 = vst [vmem:[#allocation40_spill] sm:$0xff] %v2082_v42  ;;  %v250_v42 = vmax.f32 %v249_v47, %v2106_v52 }
  0x35   :  { %3524 = vst [vmem:[#allocation41_spill] sm:$0xff] %v2084_v63  ;;  %241 = vmax.xlane.f32.xlu2 %v240_v21  ;;  %v244_v21 = vmax.f32 %v243_v49, %v2097_v24  ;;  %v2120_v63 = vld [vmem:[#allocation2 + $0x2a8] sm:$0xff] }
  0x36   :  { %3525 = vst [vmem:[#allocation42_spill] sm:$0xff] %v2087_v60  ;;  %236 = vmax.xlane.f32.xlu1 %v235_v25  ;;  %v2114_v25 = vld [vmem:[#allocation2 + $0x258] sm:$0xff]  ;;  %v2123_v60 = vld [vmem:[#allocation2 + $0x2f0] sm:$0xff] }
  0x37   :  { %3526 = vst [vmem:[#allocation43_spill] sm:$0xff] %v2091_v8  ;;  %v2118_v8 = vld [vmem:[#allocation2 + $0x2a0] sm:$0xff]  ;;  %v245_v62 = vmax.f32 %v244_v21, %v2114_v25 }
  0x38   :  { %3527 = vst [vmem:[#allocation44_spill] sm:$0xff] %v2097_v24  ;;  %231 = vmax.xlane.f32.xlu0 %v230_v44  ;;  %v263_v44 = vmax.f32 %v2108_v56, %v2110_v15  ;;  %v258_v49 = vmax.f32 %v2118_v8, %v2120_v63  ;;  %v2135_v24 = vld [vmem:[#allocation2 + $0x2f8] sm:$0xff] }
  0x39   :  { %3528 = vst [vmem:[#allocation45_spill] sm:$0xff] %v2102_v61  ;;  %v2133_v61 = vld [vmem:[#allocation2 + $0x2b0] sm:$0xff] }
  0x3a   :  { %3529 = vst [vmem:[#allocation46_spill] sm:$0xff] %v2104_v51  ;;  %v269_v51 = vmax.f32 %v268_v29, %v2123_v60  ;;  %v264_v47 = vmax.f32 %v263_v44, %v2127_v35  ;;  %v128_v44 = vld [vmem:[%s3367_s1] sm:$0xff] }
  0x3b   :  { %3530 = vst [vmem:[#allocation47_spill] sm:$0xff] %v2106_v52  ;;  %v2138_v52 = vld [vmem:[#allocation2 + $0x2d8] sm:$0xff] }
  0x3c   :  { %3531 = vst [vmem:[#allocation48_spill] sm:$0xff] %v2108_v56  ;;  %v270_v21 = vmax.f32 %v269_v51, %v2135_v24  ;;  %v2142_v56 = vld [vmem:[#allocation2 + $0x2b8] sm:$0xff]  ;;  %v124_v51 = vld [vmem:[#allocation2 + $0x300] sm:$0xff] }
  0x3d   :  { %3532 = vst [vmem:[#allocation49_spill] sm:$0xff] %v2110_v15  ;;  %256 = vmax.xlane.f32.xlu2 %v255_v27  ;;  %v259_v15 = vmax.f32 %v258_v49, %v2133_v61  ;;  %v265_v27 = vmax.f32 %v264_v47, %v2138_v52 }
  0x3e   :  { %3533 = vst [vmem:[#allocation50_spill] sm:$0xff] %v2127_v35  ;;  %251 = vmax.xlane.f32.xlu1 %v250_v42  ;;  %v129_v42 = vld [vmem:[%s3367_s1 + $0x8] sm:$0xff]  ;;  %v126_v35 = vld [vmem:[#allocation2 + $0x310] sm:$0xff] }
  0x3f   :  { %3534 = vst [vmem:[#allocation51_spill] sm:$0xff] %v2138_v52  ;;  %v260_v29 = vmax.f32 %v259_v15, %v2142_v56  ;;  %v127_v52 = vld [vmem:[#allocation2 + $0x318] sm:$0xff] }
  0x40   :  { %246 = vmax.xlane.f32.xlu0 %v245_v62  ;;  %3535 = vst [vmem:[#allocation52_spill] sm:$0xff] %v2142_v56  ;;  %v125_v62 = vld [vmem:[#allocation2 + $0x308] sm:$0xff] }
  0x41   :  { %v273_v49 = vmax.f32 %v124_v51, %v125_v62 }
  0x43   :  { %v274_v47 = vmax.f32 %v273_v49, %v126_v35 }
  0x45   :  { %271 = vmax.xlane.f32.xlu2 %v270_v21  ;;  %v275_v15 = vmax.f32 %v274_v47, %v127_v52 }
  0x46   :  { %266 = vmax.xlane.f32.xlu1 %v265_v27 }
  0x48   :  { %261 = vmax.xlane.f32.xlu0 %v260_v29 }
  0x50   :  { %276 = vmax.xlane.f32.xlu0 %v275_v15 }
  0x5d   :  { %762 = vperm.xlu2 %1501, %v129_v42  }
  0x5f   :  { %759 = vperm.xlu1 %1500, %v128_v44  }
  0x80   :  { %v177_v21 = vpop.xlane.xlu2 %176 }
  0x81   :  { %v2153_v27 = vsub.f32 %v1858_v0, %v177_v21  ;;  %v2156_v29 = vsub.f32 %v1860_v1, %v177_v21  ;;  %v2159_v56 = vsub.f32 %v1862_v2, %v177_v21  ;;  %v2162_v42 = vsub.f32 %v1870_v6, %v177_v21  ;;  %v167_v44 = vpop.xlane.xlu1 %166 }
  0x82   :  { %v2165_v51 = vsub.f32 %v1866_v4, %v167_v44  ;;  %v2168_v35 = vsub.f32 %v1868_v5, %v167_v44  ;;  %v2174_v62 = vsub.f32 %v1872_v7, %v167_v44  ;;  %v2178_v49 = vsub.f32 %v1879_v11, %v167_v44 }
  0x83   :  { %3536 = vst [vmem:[#allocation53_spill] sm:$0xff] %v2153_v27  ;;  %v410_v52 = vmul.f32 1.442695, %v2153_v27  ;;  %v412_v0 = vmul.f32 1.442695, %v2156_v29  ;;  %v157_v2 = vpop.xlane.xlu0 %156 }
  0x84   :  { %3537 = vst [vmem:[#allocation54_spill] sm:$0xff] %v2156_v29  ;;  %v414_v1 = vmul.f32 1.442695, %v2159_v56  ;;  %v416_v6 = vmul.f32 1.442695, %v2162_v42  ;;  %v2182_v5 = vsub.f32 %v1876_v9, %v157_v2  ;;  %v2186_v15 = vsub.f32 %v1881_v12, %v157_v2 }
  0x85   :  { %3538 = vst [vmem:[#allocation55_spill] sm:$0xff] %v2159_v56  ;;  %1503 = vpow2.f32 %v410_v52  ;;  %v394_v4 = vmul.f32 1.442695, %v2165_v51  ;;  %v396_v47 = vmul.f32 1.442695, %v2168_v35  ;;  %v2190_v21 = vsub.f32 %v1883_v13, %v157_v2 }
  0x86   :  { %3539 = vst [vmem:[#allocation56_spill] sm:$0xff] %v2162_v42  ;;  %1505 = vpow2.f32 %v412_v0  ;;  %v398_v7 = vmul.f32 1.442695, %v2174_v62  ;;  %v400_v11 = vmul.f32 1.442695, %v2178_v49  ;;  %v2194_v44 = vsub.f32 %v1895_v20, %v157_v2 }
  0x87   :  { %3540 = vst [vmem:[#allocation57_spill] sm:$0xff] %v2165_v51  ;;  %1507 = vpow2.f32 %v414_v1  ;;  %v378_v52 = vmul.f32 1.442695, %v2182_v5  ;;  %v380_v12 = vmul.f32 1.442695, %v2186_v15 }
  0x88   :  { %3541 = vst [vmem:[#allocation58_spill] sm:$0xff] %v2168_v35  ;;  %1509 = vpow2.f32 %v416_v6  ;;  %v182_v9 = vpop.xlane.xlu2 %181  ;;  %v382_v20 = vmul.f32 1.442695, %v2190_v21 }
  0x89   :  { %3542 = vst [vmem:[#allocation59_spill] sm:$0xff] %v2174_v62  ;;  %1511 = vpow2.f32 %v394_v4  ;;  %v2198_v0 = vsub.f32 %v1888_v16, %v182_v9  ;;  %v2202_v1 = vsub.f32 %v1890_v17, %v182_v9  ;;  %v172_v13 = vpop.xlane.xlu1 %171  ;;  %v2208_v2 = vsub.f32 %v1892_v18, %v182_v9 }
  0x8a   :  { %3543 = vst [vmem:[#allocation60_spill] sm:$0xff] %v2178_v49  ;;  %1513 = vpow2.f32 %v396_v47  ;;  %v384_v16 = vmul.f32 1.442695, %v2194_v44  ;;  %v2214_v47 = vsub.f32 %v1917_v33, %v182_v9  ;;  %v2229_v33 = vsub.f32 %v1905_v26, %v172_v13 }
  0x8b   :  { %3544 = vst [vmem:[#allocation61_spill] sm:$0xff] %v2182_v5  ;;  %v2204_v6 = vpop.eup %1503  ;;  %1515 = vpow2.f32 %v398_v7  ;;  %v162_v42 = vpop.xlane.xlu0 %161  ;;  %v418_v56 = vmul.f32 1.442695, %v2198_v0  ;;  %v2220_v7 = vsub.f32 %v1899_v22, %v172_v13  ;;  %v420_v18 = vmul.f32 1.442695, %v2202_v1 }
  0x8c   :  { %3545 = vst [vmem:[#allocation62_spill] sm:$0xff] %v2198_v0  ;;  %v2210_v4 = vpop.eup %1505  ;;  %1517 = vpow2.f32 %v400_v11  ;;  %v2226_v11 = vsub.f32 %v1901_v23, %v172_v13  ;;  %v424_v22 = vmul.f32 1.442695, %v2214_v47  ;;  %v2234_v0 = vsub.f32 %v1926_v38, %v172_v13 }
  0x8d   :  { %3546 = vst [vmem:[#allocation63_spill] sm:$0xff] %v2202_v1  ;;  %v2216_v17 = vpop.eup %1507  ;;  %1519 = vpow2.f32 %v378_v52  ;;  %v422_v52 = vmul.f32 1.442695, %v2208_v2  ;;  %v402_v1 = vmul.f32 1.442695, %v2220_v7  ;;  %v2238_v23 = vsub.f32 %v1909_v28, %v162_v42 }
  0x8e   :  { %3547 = vst [vmem:[#allocation64_spill] sm:$0xff] %v2208_v2  ;;  %v2222_v29 = vpop.eup %1509  ;;  %1521 = vpow2.f32 %v380_v12  ;;  %v406_v2 = vmul.f32 1.442695, %v2229_v33  ;;  %v2246_v38 = vsub.f32 %v1914_v31, %v162_v42 }
  0x8f   :  { %3548 = vst [vmem:[#allocation65_spill] sm:$0xff] %v2214_v47  ;;  %v1512_v9 = vpop.eup %1511  ;;  %1523 = vpow2.f32 %v382_v20  ;;  %v404_v20 = vmul.f32 1.442695, %v2226_v11  ;;  %v386_v35 = vmul.f32 1.442695, %v2238_v23 }
  0x90   :  { %3549 = vst [vmem:[#allocation66_spill] sm:$0xff] %v2220_v7  ;;  %v1514_v27 = vpop.eup %1513  ;;  %1525 = vpow2.f32 %v384_v16  ;;  %v2243_v16 = vsub.f32 %v1912_v30, %v162_v42  ;;  %v197_v47 = vpop.xlane.xlu2 %196 }
  0x91   :  { %3550 = vst [vmem:[#allocation67_spill] sm:$0xff] %v2226_v11  ;;  %v1516_v12 = vpop.eup %1515  ;;  %1527 = vpow2.f32 %v418_v56  ;;  %v2249_v56 = vsub.f32 %v1934_v43, %v162_v42  ;;  %v588_v28 = vadd.f32 %v1514_v27, %v1512_v9  ;;  %v2254_v30 = vsub.f32 %v1922_v36, %v197_v47  ;;  %v192_v11 = vpop.xlane.xlu1 %191 }
  0x92   :  { %3551 = vst [vmem:[#allocation68_spill] sm:$0xff] %v2229_v33  ;;  %v1518_v26 = vpop.eup %1517  ;;  %1529 = vpow2.f32 %v420_v18  ;;  %v408_v18 = vmul.f32 1.442695, %v2234_v0  ;;  %v388_v43 = vmul.f32 1.442695, %v2243_v16  ;;  %v2263_v51 = vsub.f32 %v1943_v48, %v197_v47 }
  0x93   :  { %3552 = vst [vmem:[#allocation69_spill] sm:$0xff] %v2234_v0  ;;  %v1520_v49 = vpop.eup %1519  ;;  %1531 = vpow2.f32 %v422_v52  ;;  %v2257_v52 = vsub.f32 %v1924_v37, %v197_v47  ;;  %v187_v42 = vpop.xlane.xlu0 %186  ;;  %v589_v27 = vadd.f32 %v1516_v12, %v588_v28  ;;  %v390_v0 = vmul.f32 1.442695, %v2246_v38 }
  0x94   :  { %3553 = vst [vmem:[#allocation70_spill] sm:$0xff] %v2238_v23  ;;  %v1522_v13 = vpop.eup %1521  ;;  %1533 = vpow2.f32 %v424_v22  ;;  %v2266_v37 = vsub.f32 %v1955_v55, %v197_v47  ;;  %v2271_v12 = vsub.f32 %v1938_v45, %v187_v42  ;;  %v2274_v48 = vsub.f32 %v1940_v46, %v187_v42 }
  0x95   :  { %v1524_v62 = vpop.eup %1523  ;;  %1535 = vpow2.f32 %v402_v1  ;;  %3554 = vst [vmem:[#allocation71_spill] sm:$0xff] %v2254_v30  ;;  %v578_v9 = vadd.f32 %v1522_v13, %v1520_v49  ;;  %v392_v1 = vmul.f32 1.442695, %v2249_v56  ;;  %v442_v49 = vmul.f32 1.442695, %v2254_v30 }
  0x96   :  { %3555 = vst [vmem:[#allocation72_spill] sm:$0xff] %v2257_v52  ;;  %v1526_v31 = vpop.eup %1525  ;;  %1537 = vpow2.f32 %v404_v20  ;;  %v590_v20 = vadd.f32 %v1518_v26, %v589_v27  ;;  %v2277_v55 = vsub.f32 %v1953_v54, %v187_v42  ;;  %v2281_v26 = vsub.f32 %v1970_v3, %v187_v42 }
  0x97   :  { %v1528_v22 = vpop.eup %1527  ;;  %1539 = vpow2.f32 %v406_v2  ;;  %3556 = vst [vmem:[#allocation73_spill] sm:$0xff] %v2263_v51  ;;  %v579_v33 = vadd.f32 %v1524_v62, %v578_v9  ;;  %v444_v2 = vmul.f32 1.442695, %v2257_v52  ;;  %v2284_v45 = vsub.f32 %v1928_v39, %v192_v11 }
  0x98   :  { %v1530_v36 = vpop.eup %1529  ;;  %1541 = vpow2.f32 %v408_v18  ;;  %3557 = vst [vmem:[#allocation74_spill] sm:$0xff] %v2266_v37  ;;  %591 = vadd.xlane.f32.xlu0 %v590_v20  ;;  %v448_v46 = vmul.f32 1.442695, %v2266_v37  ;;  %v2288_v54 = vsub.f32 %v1930_v40, %v192_v11  ;;  %v212_v18 = vpop.xlane.xlu2 %211  ;;  %v2295_v3 = vsub.f32 %v1962_v59, %v192_v11 }
  0x99   :  { %v1532_v7 = vpop.eup %1531  ;;  %1543 = vpow2.f32 %v386_v35  ;;  %v580_v62 = vadd.f32 %v1526_v31, %v579_v33  ;;  %v446_v35 = vmul.f32 1.442695, %v2263_v51  ;;  %v2292_v31 = vsub.f32 %v1947_v50, %v192_v11 }
  0x9a   :  { %v1534_v28 = vpop.eup %1533  ;;  %1545 = vpow2.f32 %v388_v43  ;;  %v428_v43 = vmul.f32 1.442695, %v2274_v48  ;;  %v430_v42 = vmul.f32 1.442695, %v2277_v55  ;;  %v432_v40 = vmul.f32 1.442695, %v2281_v26 }
  0x9b   :  { %v1536_v47 = vpop.eup %1535  ;;  %1547 = vpow2.f32 %v390_v0  ;;  %581 = vadd.xlane.f32.xlu1 %v580_v62  ;;  %v426_v0 = vmul.f32 1.442695, %v2271_v12  ;;  %v434_v9 = vmul.f32 1.442695, %v2284_v45  ;;  %v436_v59 = vmul.f32 1.442695, %v2288_v54 }
  0x9c   :  { %v1538_v13 = vpop.eup %1537  ;;  %1549 = vpow2.f32 %v392_v1  ;;  %v2302_v1 = vsub.f32 %v1958_v57, %v212_v18  ;;  %v603_v11 = vadd.f32 %v1530_v36, %v1528_v22  ;;  %v440_v62 = vmul.f32 1.442695, %v2295_v3  ;;  %v202_v57 = vpop.xlane.xlu0 %201 }
  0x9d   :  { %v1540_v33 = vpop.eup %1539  ;;  %1551 = vpow2.f32 %v442_v49  ;;  %v593_v20 = vadd.f32 %v1538_v13, %v1536_v47  ;;  %v2308_v51 = vsub.f32 %v1960_v58, %v212_v18  ;;  %v2311_v22 = vsub.f32 %v1979_v19, %v212_v18  ;;  %v207_v58 = vpop.xlane.xlu1 %206 }
  0x9e   :  { %v1542_v39 = vpop.eup %1541  ;;  %1553 = vpow2.f32 %v444_v2  ;;  %3558 = vst [vmem:[#allocation75_spill] sm:$0xff] %v2302_v1  ;;  %v438_v2 = vmul.f32 1.442695, %v2292_v31  ;;  %v604_v52 = vadd.f32 %v1532_v7, %v603_v11  ;;  %v2314_v36 = vsub.f32 %v1991_v34, %v212_v18 }
  0x9f   :  { %v1544_v27 = vpop.eup %1543  ;;  %1555 = vpow2.f32 %v446_v35  ;;  %3559 = vst [vmem:[#allocation76_spill] sm:$0xff] %v2308_v51  ;;  %v594_v30 = vadd.f32 %v1540_v33, %v593_v20  ;;  %v2318_v7 = vsub.f32 %v1974_v10, %v202_v57  ;;  %v2321_v33 = vsub.f32 %v1976_v14, %v202_v57  ;;  %v3566_v14 = vld [vmem:[#allocation8_spill] sm:$0xff]  ;;  %v3569_v20 = vld [vmem:[#allocation10_spill] sm:$0xff] }
  0xa0   :  { %v1546_v50 = vpop.eup %1545  ;;  %1557 = vpow2.f32 %v448_v46  ;;  %3560 = vst [vmem:[#allocation77_spill] sm:$0xff] %v2311_v22  ;;  %v468_v34 = vmul.f32 1.442695, %v2308_v51  ;;  %v2325_v18 = vsub.f32 %v1989_v32, %v202_v57  ;;  %v470_v10 = vmul.f32 1.442695, %v2311_v22 }
  0xa1   :  { %v1548_v49 = vpop.eup %1547  ;;  %1559 = vpow2.f32 %v426_v0  ;;  %v583_v35 = vadd.f32 %v1546_v50, %v1544_v27  ;;  %3561 = vst [vmem:[#allocation78_spill] sm:$0xff] %v2314_v36  ;;  %v466_v0 = vmul.f32 1.442695, %v2302_v1  ;;  %v595_v27 = vadd.f32 %v1542_v39, %v594_v30 }
  0xa2   :  { %v1550_v37 = vpop.eup %1549  ;;  %1561 = vpow2.f32 %v428_v43  ;;  %v605_v43 = vadd.f32 %v1534_v28, %v604_v52  ;;  %3562 = vst [vmem:[#allocation79_spill] sm:$0xff] %v2318_v7  ;;  %v2328_v52 = vsub.f32 %v2006_v53, %v202_v57  ;;  %v2332_v28 = vsub.f32 %v3566_v14, %v207_v58 }
  0xa3   :  { %v1552_v46 = vpop.eup %1551  ;;  %1563 = vpow2.f32 %v430_v42  ;;  %v584_v47 = vadd.f32 %v1548_v49, %v583_v35  ;;  %3563 = vst [vmem:[#allocation80_spill] sm:$0xff] %v2321_v33  ;;  %596 = vadd.xlane.f32.xlu1 %v595_v27  ;;  %v472_v32 = vmul.f32 1.442695, %v2314_v36  ;;  %v452_v11 = vmul.f32 1.442695, %v2321_v33 }
  0xa4   :  { %v1554_v13 = vpop.eup %1553  ;;  %1565 = vpow2.f32 %v432_v40  ;;  %3564 = vst [vmem:[#allocation81_spill] sm:$0xff] %v2325_v18  ;;  %606 = vadd.xlane.f32.xlu0 %v605_v43  ;;  %v3568_v40 = vld [vmem:[#allocation9_spill] sm:$0xff]  ;;  %v2343_v49 = vsub.f32 %v3569_v20, %v207_v58 }
  0xa5   :  { %v1556_v50 = vpop.eup %1555  ;;  %1567 = vpow2.f32 %v434_v9  ;;  %v585_v19 = vadd.f32 %v1550_v37, %v584_v47  ;;  %3565 = vst [vmem:[#allocation82_spill] sm:$0xff] %v2328_v52  ;;  %v598_v37 = vadd.f32 %v2210_v4, %v2204_v6  ;;  %v2338_v53 = vsub.f32 %v3568_v40, %v207_v58  ;;  %v222_v1 = vpop.xlane.xlu1 %221 }
  0xa6   :  { %v1558_v42 = vpop.eup %1557  ;;  %1569 = vpow2.f32 %v436_v59  ;;  %3567 = vst [vmem:[#allocation8_spill] sm:$0xff] %v2332_v28  ;;  %v450_v59 = vmul.f32 1.442695, %v2318_v7  ;;  %v454_v6 = vmul.f32 1.442695, %v2325_v18  ;;  %v618_v43 = vadd.f32 %v1554_v13, %v1552_v46  ;;  %v3573_v13 = vld [vmem:[#allocation12_spill] sm:$0xff] }
  0xa7   :  { %v1560_v30 = vpop.eup %1559  ;;  %1571 = vpow2.f32 %v438_v2  ;;  %586 = vadd.xlane.f32.xlu2 %v585_v19  ;;  %v227_v2 = vpop.xlane.xlu2 %226  ;;  %v456_v4 = vmul.f32 1.442695, %v2328_v52  ;;  %v599_v27 = vadd.f32 %v2216_v17, %v598_v37  ;;  %v460_v14 = vmul.f32 1.442695, %v2338_v53 }
  0xa8   :  { %v1562_v39 = vpop.eup %1561  ;;  %1573 = vpow2.f32 %v440_v62  ;;  %v3570_v62 = vld [vmem:[#allocation13_spill] sm:$0xff]  ;;  %v2366_v37 = vsub.f32 %v3573_v13, %v227_v2 }
  0xa9   :  { %v1564_v9 = vpop.eup %1563  ;;  %1575 = vpow2.f32 %v466_v0  ;;  %v2348_v57 = vsub.f32 %v3570_v62, %v207_v58  ;;  %v458_v0 = vmul.f32 1.442695, %v2332_v28  ;;  %v608_v20 = vadd.f32 %v1562_v39, %v1560_v30  ;;  %v217_v62 = vpop.xlane.xlu0 %216  ;;  %v3575_v30 = vld [vmem:[#allocation18_spill] sm:$0xff] }
  0xaa   :  { %v1566_v35 = vpop.eup %1565  ;;  %1577 = vpow2.f32 %v468_v34  ;;  %v3571_v34 = vld [vmem:[#allocation11_spill] sm:$0xff]  ;;  %v462_v58 = vmul.f32 1.442695, %v2343_v49  ;;  %v600_v22 = vadd.f32 %v2222_v29, %v599_v27  ;;  %3574 = vst [vmem:[#allocation10_spill] sm:$0xff] %v2366_v37  ;;  %v2369_v39 = vsub.f32 %v3575_v30, %v227_v2  ;;  %v3583_v30 = vld [vmem:[#allocation20_spill] sm:$0xff] }
  0xab   :  { %v2350_v47 = vpop.eup %1567  ;;  %1579 = vpow2.f32 %v470_v10  ;;  %v2356_v40 = vsub.f32 %v3571_v34, %v227_v2  ;;  %v619_v10 = vadd.f32 %v1556_v50, %v618_v43  ;;  %v464_v17 = vmul.f32 1.442695, %v2348_v57  ;;  %v3579_v43 = vld [vmem:[#allocation16_spill] sm:$0xff] }
  0xac   :  { %v1570_v19 = vpop.eup %1569  ;;  %1581 = vpow2.f32 %v472_v32  ;;  %v609_v32 = vadd.f32 %v1564_v9, %v608_v20  ;;  %3576 = vst [vmem:[#allocation13_spill] sm:$0xff] %v2369_v39  ;;  %v2376_v27 = vsub.f32 %v3579_v43, %v217_v62  ;;  %v2382_v52 = vsub.f32 %v3583_v30, %v217_v62 }
  0xad   :  { %3572 = vst [vmem:[#allocation9_spill] sm:$0xff] %v2356_v40  ;;  %v2358_v36 = vpop.eup %1571  ;;  %1583 = vpow2.f32 %v450_v59  ;;  %v3577_v59 = vld [vmem:[#allocation21_spill] sm:$0xff]  ;;  %v620_v50 = vadd.f32 %v1558_v42, %v619_v10 }
  0xae   :  { %v2362_v46 = vpop.eup %1573  ;;  %1585 = vpow2.f32 %v452_v11  ;;  %v2372_v51 = vsub.f32 %v3577_v59, %v227_v2  ;;  %v490_v11 = vmul.f32 1.442695, %v2356_v40  ;;  %3580 = vst [vmem:[#allocation12_spill] sm:$0xff] %v2376_v27  ;;  %v610_v13 = vadd.f32 %v1566_v35, %v609_v32  ;;  %v3585_v2 = vld [vmem:[#allocation27_spill] sm:$0xff] }
  0xaf   :  { %v1576_v34 = vpop.eup %1575  ;;  %1587 = vpow2.f32 %v454_v6  ;;  %601 = vadd.xlane.f32.xlu2 %v600_v22  ;;  %v3581_v6 = vld [vmem:[#allocation17_spill] sm:$0xff]  ;;  %3584 = vst [vmem:[#allocation21_spill] sm:$0xff] %v2382_v52  ;;  %v2385_v42 = vsub.f32 %v3585_v2, %v217_v62  ;;  %621 = vadd.xlane.f32.xlu0 %v620_v50  ;;  %v494_v35 = vmul.f32 1.442695, %v2369_v39  ;;  %v3589_v59 = vld [vmem:[#allocation15_spill] sm:$0xff]  ;;  %v613_v40 = vadd.f32 %v1570_v19, %v2350_v47 }
  0xb0   :  { %3578 = vst [vmem:[#allocation11_spill] sm:$0xff] %v2372_v51  ;;  %v1578_v29 = vpop.eup %1577  ;;  %1589 = vpow2.f32 %v456_v4  ;;  %v2379_v20 = vsub.f32 %v3581_v6, %v217_v62  ;;  %v492_v4 = vmul.f32 1.442695, %v2366_v37  ;;  %611 = vadd.xlane.f32.xlu1 %v610_v13  ;;  %v2393_v43 = vsub.f32 %v3589_v59, %v222_v1  ;;  %v3593_v59 = vld [vmem:[#allocation24_spill] sm:$0xff]  ;;  %v3597_v47 = vld [vmem:[#allocation23_spill] sm:$0xff] }
  0xb1   :  { %v1580_v9 = vpop.eup %1579  ;;  %1591 = vpow2.f32 %v458_v0  ;;  %3586 = vst [vmem:[#allocation16_spill] sm:$0xff] %v2385_v42  ;;  %v3587_v0 = vld [vmem:[#allocation14_spill] sm:$0xff]  ;;  %v496_v62 = vmul.f32 1.442695, %v2372_v51  ;;  %v474_v50 = vmul.f32 1.442695, %v2376_v27  ;;  %v2404_v37 = vsub.f32 %v3593_v59, %v222_v1 }
  0xb2   :  { %3582 = vst [vmem:[#allocation18_spill] sm:$0xff] %v2379_v20  ;;  %v1582_v22 = vpop.eup %1581  ;;  %1593 = vpow2.f32 %v460_v14  ;;  %v2390_v32 = vsub.f32 %v3587_v0, %v222_v1  ;;  %v3591_v14 = vld [vmem:[#allocation19_spill] sm:$0xff]  ;;  %v478_v2 = vmul.f32 1.442695, %v2382_v52  ;;  %v480_v0 = vmul.f32 1.442695, %v2385_v42  ;;  %v232_v52 = vpop.xlane.xlu0 %231 }
  0xb3   :  { %v1584_v10 = vpop.eup %1583  ;;  %1595 = vpow2.f32 %v462_v58  ;;  %3590 = vst [vmem:[#allocation20_spill] sm:$0xff] %v2393_v43  ;;  %v2398_v30 = vsub.f32 %v3591_v14, %v222_v1  ;;  %v476_v58 = vmul.f32 1.442695, %v2379_v20  ;;  %v633_v51 = vadd.f32 %v1578_v29, %v1576_v34  ;;  %v3595_v34 = vld [vmem:[#allocation22_spill] sm:$0xff] }
  0xb4   :  { %3588 = vst [vmem:[#allocation17_spill] sm:$0xff] %v2390_v32  ;;  %v1586_v6 = vpop.eup %1585  ;;  %1597 = vpow2.f32 %v464_v17  ;;  %v242_v17 = vpop.xlane.xlu2 %241  ;;  %v482_v14 = vmul.f32 1.442695, %v2390_v32  ;;  %v614_v1 = vadd.f32 %v2358_v36, %v613_v40  ;;  %v3601_v36 = vld [vmem:[#allocation33_spill] sm:$0xff] }
  0xb5   :  { %3592 = vst [vmem:[#allocation27_spill] sm:$0xff] %v2398_v30  ;;  %v1588_v13 = vpop.eup %1587  ;;  %1599 = vpow2.f32 %v490_v11  ;;  %v484_v11 = vmul.f32 1.442695, %v2393_v43  ;;  %v623_v20 = vadd.f32 %v1586_v6, %v1584_v10  ;;  %v486_v42 = vmul.f32 1.442695, %v2398_v30  ;;  %v3599_v10 = vld [vmem:[#allocation30_spill] sm:$0xff] }
  0xb6   :  { %v1590_v39 = vpop.eup %1589  ;;  %1601 = vpow2.f32 %v492_v4  ;;  %3594 = vst [vmem:[#allocation14_spill] sm:$0xff] %v2404_v37  ;;  %v634_v4 = vadd.f32 %v1580_v9, %v633_v51  ;;  %v2412_v29 = vsub.f32 %v3595_v34, %v242_v17  ;;  %v2415_v19 = vsub.f32 %v3597_v47, %v242_v17  ;;  %v3603_v9 = vld [vmem:[#allocation28_spill] sm:$0xff] }
  0xb7   :  { %v1592_v27 = vpop.eup %1591  ;;  %1603 = vpow2.f32 %v494_v35  ;;  %v624_v35 = vadd.f32 %v1588_v13, %v623_v20  ;;  %v2418_v6 = vsub.f32 %v3599_v10, %v242_v17  ;;  %v615_v30 = vadd.f32 %v2362_v46, %v614_v1  ;;  %v3605_v13 = vld [vmem:[#allocation29_spill] sm:$0xff] }
  0xb8   :  { %v1594_v18 = vpop.eup %1593  ;;  %1605 = vpow2.f32 %v496_v62  ;;  %3596 = vst [vmem:[#allocation15_spill] sm:$0xff] %v2412_v29  ;;  %v635_v62 = vadd.f32 %v1582_v22, %v634_v4  ;;  %v2422_v40 = vsub.f32 %v3601_v36, %v242_v17  ;;  %v488_v20 = vmul.f32 1.442695, %v2404_v37  ;;  %v237_v4 = vpop.xlane.xlu1 %236  ;;  %v3615_v37 = vld [vmem:[#allocation36_spill] sm:$0xff] }
  0xb9   :  { %v1596_v59 = vpop.eup %1595  ;;  %1607 = vpow2.f32 %v474_v50  ;;  %3598 = vst [vmem:[#allocation19_spill] sm:$0xff] %v2415_v19  ;;  %v2425_v50 = vsub.f32 %v3603_v9, %v232_v52  ;;  %v625_v34 = vadd.f32 %v1590_v39, %v624_v35  ;;  %616 = vadd.xlane.f32.xlu2 %v615_v30  ;;  %v514_v46 = vmul.f32 1.442695, %v2412_v29  ;;  %v3614_v29 = vld [vmem:[#allocation31_spill] sm:$0xff] }
  0xba   :  { %v1598_v32 = vpop.eup %1597  ;;  %1609 = vpow2.f32 %v476_v58  ;;  %3600 = vst [vmem:[#allocation24_spill] sm:$0xff] %v2418_v6  ;;  %v2429_v58 = vsub.f32 %v3605_v13, %v232_v52  ;;  %636 = vadd.xlane.f32.xlu0 %v635_v62  ;;  %v516_v39 = vmul.f32 1.442695, %v2415_v19  ;;  %v518_v30 = vmul.f32 1.442695, %v2418_v6 }
  0xbb   :  { %v1600_v51 = vpop.eup %1599  ;;  %1611 = vpow2.f32 %v478_v2  ;;  %3602 = vst [vmem:[#allocation22_spill] sm:$0xff] %v2422_v40  ;;  %v3607_v2 = vld [vmem:[#allocation32_spill] sm:$0xff]  ;;  %626 = vadd.xlane.f32.xlu1 %v625_v34  ;;  %v498_v62 = vmul.f32 1.442695, %v2425_v50  ;;  %v3611_v34 = vld [vmem:[#allocation25_spill] sm:$0xff]  ;;  %v628_v6 = vadd.f32 %v1594_v18, %v1592_v27 }
  0xbc   :  { %3604 = vst [vmem:[#allocation23_spill] sm:$0xff] %v2425_v50  ;;  %v1602_v47 = vpop.eup %1601  ;;  %1613 = vpow2.f32 %v480_v0  ;;  %v2433_v17 = vsub.f32 %v3607_v2, %v232_v52  ;;  %v3609_v0 = vld [vmem:[#allocation39_spill] sm:$0xff]  ;;  %v500_v9 = vmul.f32 1.442695, %v2429_v58  ;;  %v2444_v13 = vsub.f32 %v3611_v34, %v237_v4 }
  0xbd   :  { %3606 = vst [vmem:[#allocation30_spill] sm:$0xff] %v2429_v58  ;;  %v1604_v22 = vpop.eup %1603  ;;  %1615 = vpow2.f32 %v482_v14  ;;  %v2437_v35 = vsub.f32 %v3609_v0, %v232_v52  ;;  %v520_v14 = vmul.f32 1.442695, %v2422_v40  ;;  %v648_v0 = vadd.f32 %v1602_v47, %v1600_v51  ;;  %v257_v58 = vpop.xlane.xlu2 %256 }
  0xbe   :  { %3608 = vst [vmem:[#allocation33_spill] sm:$0xff] %v2433_v17  ;;  %v1606_v1 = vpop.eup %1605  ;;  %1617 = vpow2.f32 %v484_v11  ;;  %v3613_v11 = vld [vmem:[#allocation26_spill] sm:$0xff]  ;;  %v506_v18 = vmul.f32 1.442695, %v2444_v13  ;;  %v247_v51 = vpop.xlane.xlu0 %246 }
  0xbf   :  { %3610 = vst [vmem:[#allocation28_spill] sm:$0xff] %v2437_v35  ;;  %v1608_v10 = vpop.eup %1607  ;;  %1619 = vpow2.f32 %v486_v42  ;;  %v2447_v2 = vsub.f32 %v3613_v11, %v237_v4  ;;  %v502_v42 = vmul.f32 1.442695, %v2433_v17  ;;  %v504_v40 = vmul.f32 1.442695, %v2437_v35 }
  0xc0   :  { %v1610_v36 = vpop.eup %1609  ;;  %1621 = vpow2.f32 %v488_v20  ;;  %3612 = vst [vmem:[#allocation29_spill] sm:$0xff] %v2444_v13  ;;  %v2452_v20 = vsub.f32 %v3614_v29, %v237_v4  ;;  %v2455_v11 = vsub.f32 %v3615_v37, %v237_v4  ;;  %v649_v43 = vadd.f32 %v1604_v22, %v648_v0  ;;  %v3616_v29 = vld [vmem:[#allocation34_spill] sm:$0xff]  ;;  %v3618_v37 = vld [vmem:[#allocation35_spill] sm:$0xff] }
  0xc1   :  { %v1612_v52 = vpop.eup %1611  ;;  %1623 = vpow2.f32 %v514_v46  ;;  %v638_v50 = vadd.f32 %v1610_v36, %v1608_v10  ;;  %v629_v46 = vadd.f32 %v1596_v59, %v628_v6  ;;  %v508_v27 = vmul.f32 1.442695, %v2447_v2  ;;  %v3620_v59 = vld [vmem:[#allocation42_spill] sm:$0xff] }
  0xc2   :  { %v1614_v19 = vpop.eup %1613  ;;  %1625 = vpow2.f32 %v516_v39  ;;  %v2460_v35 = vsub.f32 %v3616_v29, %v257_v58  ;;  %v650_v10 = vadd.f32 %v1606_v1, %v649_v43  ;;  %v2463_v22 = vsub.f32 %v3618_v37, %v257_v58  ;;  %v3625_v1 = vld [vmem:[#allocation41_spill] sm:$0xff] }
  0xc3   :  { %v1616_v34 = vpop.eup %1615  ;;  %1627 = vpow2.f32 %v518_v30  ;;  %v639_v47 = vadd.f32 %v1612_v52, %v638_v50  ;;  %v630_v30 = vadd.f32 %v1598_v32, %v629_v46  ;;  %v2466_v6 = vsub.f32 %v3620_v59, %v257_v58  ;;  %v3623_v52 = vld [vmem:[#allocation40_spill] sm:$0xff] }
  0xc4   :  { %v1618_v33 = vpop.eup %1617  ;;  %1629 = vpow2.f32 %v520_v14  ;;  %3617 = vst [vmem:[#allocation32_spill] sm:$0xff] %v2460_v35  ;;  %v510_v50 = vmul.f32 1.442695, %v2452_v20  ;;  %v2473_v0 = vsub.f32 %v3623_v52, %v247_v51  ;;  %651 = vadd.xlane.f32.xlu0 %v650_v10  ;;  %v512_v43 = vmul.f32 1.442695, %v2455_v11  ;;  %v3626_v46 = vld [vmem:[#allocation44_spill] sm:$0xff] }
  0xc5   :  { %v1620_v39 = vpop.eup %1619  ;;  %1631 = vpow2.f32 %v498_v62  ;;  %3619 = vst [vmem:[#allocation39_spill] sm:$0xff] %v2463_v22  ;;  %v640_v4 = vadd.f32 %v1614_v19, %v639_v47  ;;  %v2470_v62 = vsub.f32 %v2099_v41, %v257_v58  ;;  %631 = vadd.xlane.f32.xlu2 %v630_v30  ;;  %v2481_v41 = vsub.f32 %v3626_v46, %v247_v51 }
  0xc6   :  { %v1622_v36 = vpop.eup %1621  ;;  %1633 = vpow2.f32 %v500_v9  ;;  %3621 = vst [vmem:[#allocation25_spill] sm:$0xff] %v2466_v6  ;;  %v2477_v9 = vsub.f32 %v3625_v1, %v247_v51  ;;  %v540_v47 = vmul.f32 1.442695, %v2463_v22  ;;  %v542_v29 = vmul.f32 1.442695, %v2466_v6  ;;  %v3628_v6 = vld [vmem:[#allocation37_spill] sm:$0xff] }
  0xc7   :  { %v1624_v14 = vpop.eup %1623  ;;  %1635 = vpow2.f32 %v502_v42  ;;  %3622 = vst [vmem:[#allocation26_spill] sm:$0xff] %v2470_v62  ;;  %641 = vadd.xlane.f32.xlu1 %v640_v4  ;;  %v538_v42 = vmul.f32 1.442695, %v2460_v35  ;;  %v544_v30 = vmul.f32 1.442695, %v2470_v62  ;;  %v2487_v37 = vsub.f32 %v2114_v25, %v247_v51  ;;  %v3629_v25 = vld [vmem:[#allocation38_spill] sm:$0xff]  ;;  %v272_v35 = vpop.xlane.xlu2 %271 }
  0xc8   :  { %3624 = vst [vmem:[#allocation31_spill] sm:$0xff] %v2473_v0  ;;  %v1626_v32 = vpop.eup %1625  ;;  %1637 = vpow2.f32 %v504_v40  ;;  %v252_v40 = vpop.xlane.xlu1 %251  ;;  %v524_v4 = vmul.f32 1.442695, %v2477_v9  ;;  %v526_v46 = vmul.f32 1.442695, %v2481_v41 }
  0xc9   :  { %v1628_v19 = vpop.eup %1627  ;;  %1639 = vpow2.f32 %v506_v18  ;;  %3627 = vst [vmem:[#allocation36_spill] sm:$0xff] %v2487_v37  ;;  %v522_v18 = vmul.f32 1.442695, %v2473_v0  ;;  %v663_v52 = vadd.f32 %v1626_v32, %v1624_v14  ;;  %v2493_v22 = vsub.f32 %v3628_v6, %v252_v40  ;;  %v3631_v6 = vld [vmem:[#allocation47_spill] sm:$0xff] }
  0xca   :  { %v1630_v58 = vpop.eup %1629  ;;  %1641 = vpow2.f32 %v508_v27  ;;  %v643_v27 = vadd.f32 %v1618_v33, %v1616_v34  ;;  %v2496_v51 = vsub.f32 %v3629_v25, %v252_v40  ;;  %v528_v33 = vmul.f32 1.442695, %v2487_v37  ;;  %v3630_v34 = vld [vmem:[#allocation43_spill] sm:$0xff] }
  0xcb   :  { %v1632_v10 = vpop.eup %1631  ;;  %1643 = vpow2.f32 %v510_v50  ;;  %v664_v0 = vadd.f32 %v1628_v19, %v663_v52  ;;  %v2500_v14 = vsub.f32 %v3630_v34, %v252_v40  ;;  %v530_v19 = vmul.f32 1.442695, %v2493_v22 }
  0xcc   :  { %v1634_v59 = vpop.eup %1633  ;;  %1645 = vpow2.f32 %v512_v43  ;;  %v644_v43 = vadd.f32 %v1620_v39, %v643_v27  ;;  %v3632_v39 = vld [vmem:[#allocation45_spill] sm:$0xff] }
  0xcd   :  { %v1636_v1 = vpop.eup %1635  ;;  %1647 = vpow2.f32 %v538_v42  ;;  %v653_v50 = vadd.f32 %v1634_v59, %v1632_v10  ;;  %v2503_v10 = vsub.f32 %v3631_v6, %v252_v40  ;;  %v2507_v52 = vsub.f32 %v3632_v39, %v272_v35 }
  0xce   :  { %v1638_v62 = vpop.eup %1637  ;;  %1649 = vpow2.f32 %v540_v47  ;;  %v665_v47 = vadd.f32 %v1630_v58, %v664_v0  ;;  %v645_v59 = vadd.f32 %v1622_v36, %v644_v43  ;;  %v2514_v40 = vsub.f32 %v2123_v60, %v272_v35 }
  0xcf   :  { %v1640_v17 = vpop.eup %1639  ;;  %1651 = vpow2.f32 %v542_v29  ;;  %v654_v32 = vadd.f32 %v1636_v1, %v653_v50  ;;  %v262_v29 = vpop.xlane.xlu0 %261  ;;  %v532_v1 = vmul.f32 1.442695, %v2496_v51  ;;  %v3633_v50 = vld [vmem:[#allocation46_spill] sm:$0xff]  ;;  %v534_v0 = vmul.f32 1.442695, %v2500_v14 }
  0xd0   :  { %v1642_v42 = vpop.eup %1641  ;;  %1653 = vpow2.f32 %v544_v30  ;;  %v2511_v30 = vsub.f32 %v3633_v50, %v272_v35  ;;  %3634 = vst [vmem:[#allocation34_spill] sm:$0xff] %v2514_v40  ;;  %666 = vadd.xlane.f32.xlu0 %v665_v47  ;;  %646 = vadd.xlane.f32.xlu2 %v645_v59  ;;  %v2518_v58 = vsub.f32 %v2135_v24, %v272_v35  ;;  %v562_v34 = vmul.f32 1.442695, %v2507_v52 }
  0xd1   :  { %v1644_v25 = vpop.eup %1643  ;;  %1655 = vpow2.f32 %v522_v18  ;;  %v655_v27 = vadd.f32 %v1638_v62, %v654_v32  ;;  %v658_v62 = vadd.f32 %v1642_v42, %v1640_v17  ;;  %v2522_v43 = vsub.f32 %v2118_v8, %v262_v29 }
  0xd2   :  { %v1646_v37 = vpop.eup %1645  ;;  %1657 = vpow2.f32 %v524_v4  ;;  %3635 = vst [vmem:[#allocation35_spill] sm:$0xff] %v2518_v58  ;;  %v536_v4 = vmul.f32 1.442695, %v2503_v10  ;;  %v564_v24 = vmul.f32 1.442695, %v2511_v30  ;;  %v2528_v17 = vsub.f32 %v2120_v63, %v262_v29  ;;  %v3637_v63 = vld [vmem:[#allocation48_spill] sm:$0xff] }
  0xd3   :  { %v1648_v36 = vpop.eup %1647  ;;  %1659 = vpow2.f32 %v526_v46  ;;  %656 = vadd.xlane.f32.xlu1 %v655_v27  ;;  %v659_v46 = vadd.f32 %v1644_v25, %v658_v62  ;;  %v566_v35 = vmul.f32 1.442695, %v2514_v40  ;;  %v568_v8 = vmul.f32 1.442695, %v2518_v58  ;;  %v3636_v25 = vld [vmem:[#allocation52_spill] sm:$0xff] }
  0xd4   :  { %v1650_v18 = vpop.eup %1649  ;;  %1661 = vpow2.f32 %v528_v33  ;;  %v267_v33 = vpop.xlane.xlu1 %266  ;;  %v2532_v47 = vsub.f32 %v2133_v61, %v262_v29  ;;  %v2535_v39 = vsub.f32 %v3636_v25, %v262_v29  ;;  %v546_v27 = vmul.f32 1.442695, %v2522_v43 }
  0xd5   :  { %v1652_v60 = vpop.eup %1651  ;;  %1663 = vpow2.f32 %v530_v19  ;;  %v678_v32 = vadd.f32 %v1650_v18, %v1648_v36  ;;  %v2539_v36 = vsub.f32 %v3637_v63, %v267_v33  ;;  %v548_v61 = vmul.f32 1.442695, %v2528_v17 }
  0xd6   :  { %v1654_v6 = vpop.eup %1653  ;;  %1665 = vpow2.f32 %v532_v1  ;;  %v660_v1 = vadd.f32 %v1646_v37, %v659_v46  ;;  %v3639_v37 = vld [vmem:[#allocation50_spill] sm:$0xff] }
  0xd7   :  { %v1656_v42 = vpop.eup %1655  ;;  %1667 = vpow2.f32 %v534_v0  ;;  %v679_v59 = vadd.f32 %v1652_v60, %v678_v32  ;;  %v3638_v60 = vld [vmem:[#allocation49_spill] sm:$0xff]  ;;  %v2547_v46 = vsub.f32 %v3639_v37, %v267_v33 }
  0xd8   :  { %v1658_v19 = vpop.eup %1657  ;;  %1669 = vpow2.f32 %v536_v4  ;;  %v2543_v32 = vsub.f32 %v3638_v60, %v267_v33  ;;  %661 = vadd.xlane.f32.xlu2 %v660_v1  ;;  %v550_v4 = vmul.f32 1.442695, %v2532_v47 }
  0xd9   :  { %v1660_v50 = vpop.eup %1659  ;;  %1671 = vpow2.f32 %v562_v34  ;;  %v680_v0 = vadd.f32 %v1654_v6, %v679_v59  ;;  %v668_v62 = vadd.f32 %v1658_v19, %v1656_v42  ;;  %v552_v6 = vmul.f32 1.442695, %v2535_v39 }
  0xda   :  { %v1662_v18 = vpop.eup %1661  ;;  %1673 = vpow2.f32 %v564_v24  ;;  %v3640_v24 = vld [vmem:[#allocation51_spill] sm:$0xff]  ;;  %v554_v19 = vmul.f32 1.442695, %v2539_v36  ;;  %v556_v60 = vmul.f32 1.442695, %v2543_v32 }
  0xdb   :  { %v1664_v29 = vpop.eup %1663  ;;  %1675 = vpow2.f32 %v566_v35  ;;  %681 = vadd.xlane.f32.xlu0 %v680_v0  ;;  %v669_v34 = vadd.f32 %v1660_v50, %v668_v62  ;;  %v2551_v42 = vsub.f32 %v3640_v24, %v267_v33  ;;  %v558_v50 = vmul.f32 1.442695, %v2547_v46 }
  0xdc   :  { %v1666_v25 = vpop.eup %1665  ;;  %1677 = vpow2.f32 %v568_v8 }
  0xdd   :  { %3641 = vst [vmem:[#allocation42_spill] sm:$0xff] %v2551_v42  ;;  %v1668_v59 = vpop.eup %1667  ;;  %1679 = vpow2.f32 %v546_v27  ;;  %v670_v1 = vadd.f32 %v1662_v18, %v669_v34  ;;  %v673_v35 = vadd.f32 %v1666_v25, %v1664_v29  ;;  %v560_v33 = vmul.f32 1.442695, %v2551_v42 }
  0xde   :  { %v1670_v63 = vpop.eup %1669  ;;  %1681 = vpow2.f32 %v548_v61 }
  0xdf   :  { %v1672_v37 = vpop.eup %1671  ;;  %1683 = vpow2.f32 %v550_v4  ;;  %671 = vadd.xlane.f32.xlu1 %v670_v1  ;;  %v674_v8 = vadd.f32 %v1668_v59, %v673_v35 }
  0xe0   :  { %v1674_v0 = vpop.eup %1673  ;;  %1685 = vpow2.f32 %v552_v6 }
  0xe1   :  { %v1676_v62 = vpop.eup %1675  ;;  %1687 = vpow2.f32 %v554_v19  ;;  %v693_v27 = vadd.f32 %v1674_v0, %v1672_v37  ;;  %v675_v24 = vadd.f32 %v1670_v63, %v674_v8  ;;  %v137_v0 = vld [vmem:[%s3367_s1 + $0x48] sm:$0xff] }
  0xe2   :  { %v1678_v18 = vpop.eup %1677  ;;  %1689 = vpow2.f32 %v556_v60 }
  0xe3   :  { %v1680_v29 = vpop.eup %1679  ;;  %1691 = vpow2.f32 %v558_v50  ;;  %v694_v61 = vadd.f32 %v1676_v62, %v693_v27  ;;  %676 = vadd.xlane.f32.xlu2 %v675_v24  ;;  %v130_v50 = vld [vmem:[%s3367_s1 + $0x10] sm:$0xff]  ;;  %v133_v27 = vld [vmem:[%s3367_s1 + $0x28] sm:$0xff]  ;;  %v143_v24 = vld [vmem:[%s3367_s1 + $0x78] sm:$0xff] }
  0xe4   :  { %v1682_v34 = vpop.eup %1681  ;;  %1693 = vpow2.f32 %v560_v33  ;;  %v132_v33 = vld [vmem:[%s3367_s1 + $0x20] sm:$0xff]  ;;  %v134_v62 = vld [vmem:[%s3367_s1 + $0x30] sm:$0xff] }
  0xe5   :  { %v1684_v4 = vpop.eup %1683  ;;  %v695_v25 = vadd.f32 %v1678_v18, %v694_v61  ;;  %v683_v1 = vadd.f32 %v1682_v34, %v1680_v29  ;;  %v136_v18 = vld [vmem:[%s3367_s1 + $0x40] sm:$0xff]  ;;  %v135_v29 = vld [vmem:[%s3367_s1 + $0x38] sm:$0xff]  ;;  %v2587_v61 = vpop.permute.xlu2 %762 }
  0xe6   :  { %v1686_v59 = vpop.eup %1685  ;;  %v2589_v34 = vpop.xlane.xlu0 %276 }
  0xe7   :  { %v1688_v35 = vpop.eup %1687  ;;  %696 = vadd.xlane.f32.xlu0 %v695_v25  ;;  %v684_v6 = vadd.f32 %v1684_v4, %v683_v1  ;;  %v146_v4 = vld [vmem:[%s3367_s1 + $0x90] sm:$0xff]  ;;  %v139_v25 = vld [vmem:[%s3367_s1 + $0x58] sm:$0xff] }
  0xe8   :  { %v1690_v58 = vpop.eup %1689  ;;  %v138_v1 = vld [vmem:[%s3367_s1 + $0x50] sm:$0xff] }
  0xe9   :  { %v1692_v42 = vpop.eup %1691  ;;  %v685_v19 = vadd.f32 %v1686_v59, %v684_v6  ;;  %v688_v37 = vadd.f32 %v1690_v58, %v1688_v35  ;;  %v131_v58 = vld [vmem:[%s3367_s1 + $0x18] sm:$0xff]  ;;  %v2602_v35 = vpop.permute.xlu1 %759  ;;  %v149_v6 = vld [vmem:[%s3367_s1 + $0xa8] sm:$0xff] }
  0xea   :  { %v1694_v63 = vpop.eup %1693 }
  0xeb   :  { %686 = vadd.xlane.f32.xlu1 %v685_v19  ;;  %v689_v60 = vadd.f32 %v1692_v42, %v688_v37  ;;  %v140_v42 = vld [vmem:[%s3367_s1 + $0x60] sm:$0xff]  ;;  %v142_v19 = vld [vmem:[%s3367_s1 + $0x70] sm:$0xff] }
  0xed   :  { %v690_v8 = vadd.f32 %v1694_v63, %v689_v60  ;;  %v141_v63 = vld [vmem:[%s3367_s1 + $0x68] sm:$0xff] }
  0xef   :  { %691 = vadd.xlane.f32.xlu2 %v690_v8 }
  0xfb   :  { %765 = vperm.xlu0 %1502, %v130_v50   ;;  %v152_v50 = vld [vmem:[%s3367_s1 + $0xc0] sm:$0xff] }
 0x103   :  { %786 = vperm.xlu0 %1502, %v137_v0   ;;  %v145_v0 = vld [vmem:[%s3367_s1 + $0x88] sm:$0xff] }
 0x104   :  { %771 = vperm.xlu1 %1500, %v132_v33  }
 0x107   :  { %768 = vperm.xlu2 %1501, %v131_v58   ;;  %v144_v58 = vld [vmem:[%s3367_s1 + $0x80] sm:$0xff] }
 0x10b   :  { %795 = vperm.xlu0 %1502, %v140_v42   ;;  %v2610_v37 = vpop.xlane.xlu0 %591  ;;  %v148_v42 = vld [vmem:[%s3367_s1 + $0xa0] sm:$0xff] }
 0x10c   :  { %777 = vperm.xlu1 %1500, %v134_v62   ;;  %3643 = vst [vmem:[#allocation41_spill] sm:$0xff] %v2610_v37 }
 0x10e   :  { %v2617_v8 = vpop.xlane.xlu1 %581 }
 0x10f   :  { %774 = vperm.xlu2 %1501, %v133_v27   ;;  %3645 = vst [vmem:[#allocation37_spill] sm:$0xff] %v2617_v8  ;;  %v3674_v8 = vld [vmem:[#allocation60_spill] sm:$0xff] }
 0x113   :  { %804 = vperm.xlu0 %1502, %v143_v24  }
 0x114   :  { %783 = vperm.xlu1 %1500, %v136_v18   ;;  %v147_v18 = vld [vmem:[%s3367_s1 + $0x98] sm:$0xff] }
 0x116   :  { %v2635_v27 = vpop.xlane.xlu1 %596 }
 0x117   :  { %780 = vperm.xlu2 %1501, %v135_v29   ;;  %v2625_v33 = vpop.xlane.xlu0 %606  ;;  %3648 = vst [vmem:[#allocation47_spill] sm:$0xff] %v2635_v27  ;;  %v151_v29 = vld [vmem:[%s3367_s1 + $0xb8] sm:$0xff] }
 0x118   :  { %3646 = vst [vmem:[#allocation38_spill] sm:$0xff] %v2625_v33  ;;  %v3662_v33 = vmov 0.00019607843  }
 0x11a   :  { %v2600_v59 = vpop.xlane.xlu2 %586 }
 0x11b   :  { %813 = vperm.xlu0 %1502, %v146_v4   ;;  %3642 = vst [vmem:[#allocation40_spill] sm:$0xff] %v2600_v59 }
 0x11c   :  { %792 = vperm.xlu1 %1500, %v139_v25  }
 0x11f   :  { %789 = vperm.xlu2 %1501, %v138_v1   ;;  %v150_v1 = vld [vmem:[%s3367_s1 + $0xb0] sm:$0xff] }
 0x122   :  { %v2615_v60 = vpop.xlane.xlu2 %601  ;;  %v2637_v24 = vpop.xlane.xlu0 %621 }
 0x123   :  { %822 = vperm.xlu0 %1502, %v149_v6   ;;  %3644 = vst [vmem:[#allocation44_spill] sm:$0xff] %v2615_v60  ;;  %v2647_v25 = vpop.xlane.xlu1 %611 }
 0x124   :  { %801 = vperm.xlu1 %1500, %v142_v19   ;;  %3649 = vst [vmem:[#allocation45_spill] sm:$0xff] %v2637_v24 }
 0x125   :  { %3651 = vst [vmem:[#allocation52_spill] sm:$0xff] %v2647_v25 }
 0x127   :  { %798 = vperm.xlu2 %1501, %v141_v63   ;;  %v3482_v63 = vlaneseq }
 0x12b   :  { %831 = vperm.xlu0 %1502, %v152_v50  }
 0x12c   :  { %810 = vperm.xlu1 %1500, %v145_v0   ;;  %v2633_v62 = vpop.xlane.xlu2 %616 }
 0x12d   :  { %3647 = vst [vmem:[#allocation43_spill] sm:$0xff] %v2633_v62  ;;  %v2652_v6 = vpop.xlane.xlu0 %636 }
 0x12e   :  { %3652 = vst [vmem:[#allocation48_spill] sm:$0xff] %v2652_v6  ;;  %v2656_v50 = vpop.xlane.xlu1 %626 }
 0x12f   :  { %807 = vperm.xlu2 %1501, %v144_v58   ;;  %3654 = vst [vmem:[#allocation50_spill] sm:$0xff] %v2656_v50  ;;  %v2661_v58 = vand.u32 127, %v3482_v63  ;;  %v3483_v63 = vmov 0.00019607843  }
 0x131   :  { %vm837_vm0 = vcmp.eq.s32.totalorder %v2661_v58, %v2587_v61  ;;  %vm833_vm2 = vcmp.eq.s32.totalorder %v2661_v58, %v2602_v35 }
 0x134   :  { %819 = vperm.xlu1 %1500, %v148_v42   ;;  %v2664_v42 = vadd.s32 128, %v2661_v58 }
 0x136   :  { %vm838_vm1 = vcmp.eq.s32.totalorder %v2664_v42, %v2587_v61  ;;  %vm834_vm3 = vcmp.eq.s32.totalorder %v2664_v42, %v2602_v35 }
 0x137   :  { %816 = vperm.xlu2 %1501, %v147_v18   ;;  %v2658_v0 = vpop.xlane.xlu0 %651 }
 0x138   :  { %v2645_v4 = vpop.xlane.xlu2 %631  ;;  %3655 = vst [vmem:[#allocation51_spill] sm:$0xff] %v2658_v0  ;;  %v937_v0 = vsel %vm837_vm0, 0.9, %v3483_v63 }
 0x139   :  { %3650 = vst [vmem:[#allocation46_spill] sm:$0xff] %v2645_v4  ;;  %v1037_v50 = vmul.f32 %v937_v0, %v2238_v23 }
 0x13c   :  { %828 = vperm.xlu1 %1500, %v151_v29   ;;  %v2668_v29 = vpop.xlane.xlu1 %641 }
 0x13d   :  { %3657 = vst [vmem:[#allocation84_spill] sm:$0xff] %v2668_v29  ;;  %v934_v29 = vsel %vm834_vm3, 0.9, %v3483_v63 }
 0x13f   :  { %825 = vperm.xlu2 %1501, %v150_v1   ;;  %v2677_v1 = vadd.s32 256, %v2661_v58 }
 0x141   :  { %vm839_vm4 = vcmp.eq.s32.totalorder %v2677_v1, %v2587_v61  ;;  %vm835_vm5 = vcmp.eq.s32.totalorder %v2677_v1, %v2602_v35 }
 0x142   :  { %v935_v0 = vsel %vm835_vm5, 0.9, %v3662_v33 }
 0x143   :  { %v2654_v19 = vpop.xlane.xlu2 %646  ;;  %v2670_v24 = vpop.xlane.xlu0 %666 }
 0x144   :  { %3653 = vst [vmem:[#allocation49_spill] sm:$0xff] %v2654_v19  ;;  %v2692_v19 = vadd.s32 384, %v2661_v58 }
 0x145   :  { %3658 = vst [vmem:[#allocation85_spill] sm:$0xff] %v2670_v24  ;;  %v938_v24 = vsel %vm838_vm1, 0.9, %v3483_v63 }
 0x146   :  { %v1038_v4 = vmul.f32 %v938_v24, %v2243_v16  ;;  %v2698_v25 = vpop.xlane.xlu1 %656  ;;  %vm840_vm6 = vcmp.eq.s32.totalorder %v2692_v19, %v2587_v61  ;;  %vm836_vm7 = vcmp.eq.s32.totalorder %v2692_v19, %v2602_v35 }
 0x147   :  { %3660 = vst [vmem:[#allocation87_spill] sm:$0xff] %v2698_v25 }
 0x148   :  { %v1138_v37 = vadd.f32 %v1038_v4, %v1037_v50 }
 0x14b   :  { %v2666_v18 = vpop.xlane.xlu2 %661 }
 0x14c   :  { %3656 = vst [vmem:[#allocation83_spill] sm:$0xff] %v2666_v18  ;;  %v933_v18 = vsel %vm833_vm2, 0.9, %v3483_v63  ;;  %v1034_v63 = vmul.f32 %v934_v29, %v2186_v15  ;;  %v1035_v15 = vmul.f32 %v935_v0, %v2190_v21  ;;  %v936_v29 = vsel %vm836_vm7, 0.9, %v3662_v33  ;;  %v1753_v21 = vld [vmem:[#allocation2 + $0x300] sm:$0xff] }
 0x14d   :  { %v1033_v62 = vmul.f32 %v933_v18, %v2182_v5  ;;  %v940_v18 = vsel %vm840_vm6, 0.9, %v3662_v33 }
 0x14e   :  { %v2702_v60 = vpop.xlane.xlu0 %681  ;;  %v1040_v61 = vmul.f32 %v940_v18, %v2249_v56  ;;  %v2727_v56 = vsub.f32 %v1753_v21, %v2589_v34 }
 0x14f   :  { %3661 = vst [vmem:[#allocation88_spill] sm:$0xff] %v2702_v60  ;;  %v1133_v24 = vadd.f32 %v1034_v63, %v1033_v62 }
 0x151   :  { %v1134_v4 = vadd.f32 %v1133_v24, %v1035_v15  ;;  %v3666_v24 = vld [vmem:[#allocation66_spill] sm:$0xff]  ;;  %v3667_v15 = vld [vmem:[#allocation67_spill] sm:$0xff] }
 0x152   :  { %v2717_v50 = vpop.xlane.xlu1 %671 }
 0x153   :  { %3664 = vst [vmem:[#allocation90_spill] sm:$0xff] %v2717_v50 }
 0x156   :  { %v2689_v6 = vpop.xlane.xlu2 %676 }
 0x157   :  { %3659 = vst [vmem:[#allocation86_spill] sm:$0xff] %v2689_v6  ;;  %v939_v6 = vsel %vm839_vm4, 0.9, %v3662_v33 }
 0x158   :  { %v1039_v16 = vmul.f32 %v939_v6, %v2246_v38  ;;  %v1036_v38 = vmul.f32 %v936_v29, %v2194_v44 }
 0x15a   :  { %v1139_v25 = vadd.f32 %v1138_v37, %v1039_v16  ;;  %v2720_v6 = vpop.xlane.xlu0 %696  ;;  %v1135_v35 = vadd.f32 %v1134_v4, %v1036_v38  ;;  %v3669_v4 = vld [vmem:[#allocation68_spill] sm:$0xff] }
 0x15b   :  { %3665 = vst [vmem:[#allocation91_spill] sm:$0xff] %v2720_v6  ;;  %v3671_v6 = vld [vmem:[#allocation58_spill] sm:$0xff] }
 0x15c   :  { %v1140_v27 = vadd.f32 %v1139_v25, %v1040_v61  ;;  %v1754_v25 = vld [vmem:[#allocation2 + $0x308] sm:$0xff] }
 0x15d   :  { %v2733_v63 = vsub.f32 %v1754_v25, %v2589_v34  ;;  %v3670_v25 = vld [vmem:[#allocation57_spill] sm:$0xff] }
 0x15e   :  { %v2738_v61 = vpop.xlane.xlu1 %686 }
 0x15f   :  { %3668 = vst [vmem:[#allocation67_spill] sm:$0xff] %v2738_v61  ;;  %v1755_v61 = vld [vmem:[#allocation2 + $0x310] sm:$0xff] }
 0x160   :  { %v2752_v50 = vsub.f32 %v1755_v61, %v2589_v34 }
 0x162   :  { %v2714_v60 = vpop.xlane.xlu2 %691 }
 0x163   :  { %3663 = vst [vmem:[#allocation89_spill] sm:$0xff] %v2714_v60 }
 0x166   :  { %1141 = vadd.xlane.f32.xlu1 %v1140_v27 }
 0x168   :  { %1136 = vadd.xlane.f32.xlu2 %v1135_v35 }
 0x16a   :  { %v769_v37 = vpop.permute.xlu2 %768 }
 0x16b   :  { %vm845_vm8 = vcmp.eq.s32.totalorder %v2661_v58, %v769_v37  ;;  %vm846_vm9 = vcmp.eq.s32.totalorder %v2664_v42, %v769_v37  ;;  %vm847_vm10 = vcmp.eq.s32.totalorder %v2677_v1, %v769_v37  ;;  %vm848_vm11 = vcmp.eq.s32.totalorder %v2692_v19, %v769_v37 }
 0x16c   :  { %v945_v44 = vsel %vm845_vm8, 0.9, %v3662_v33  ;;  %v946_v62 = vsel %vm846_vm9, 0.9, %v3662_v33  ;;  %v947_v27 = vsel %vm847_vm10, 0.9, %v3662_v33 }
 0x16d   :  { %v766_v0 = vpop.permute.xlu0 %765  ;;  %v948_v16 = vsel %vm848_vm11, 0.9, %v3662_v33  ;;  %v1045_v18 = vmul.f32 %v945_v44, %v3666_v24  ;;  %v1046_v29 = vmul.f32 %v946_v62, %v3667_v15  ;;  %v1047_v38 = vmul.f32 %v947_v27, %v3669_v4  ;;  %v3672_v4 = vld [vmem:[#allocation69_spill] sm:$0xff] }
 0x16e   :  { %vm841_vm12 = vcmp.eq.s32.totalorder %v2661_v58, %v766_v0  ;;  %vm842_vm13 = vcmp.eq.s32.totalorder %v2664_v42, %v766_v0  ;;  %vm843_vm14 = vcmp.eq.s32.totalorder %v2677_v1, %v766_v0  ;;  %vm844_vm15 = vcmp.eq.s32.totalorder %v2692_v19, %v766_v0 }
 0x16f   :  { %v941_v35 = vsel %vm841_vm12, 0.9, %v3662_v33  ;;  %v942_v37 = vsel %vm842_vm13, 0.9, %v3662_v33  ;;  %v1148_v21 = vadd.f32 %v1046_v29, %v1045_v18  ;;  %v943_v44 = vsel %vm843_vm14, 0.9, %v3662_v33 }
 0x170   :  { %v944_v62 = vsel %vm844_vm15, 0.9, %v3662_v33  ;;  %v1041_v15 = vmul.f32 %v941_v35, %v3670_v25  ;;  %v1042_v60 = vmul.f32 %v942_v37, %v3671_v6  ;;  %v570_v27 = vmul.f32 1.442695, %v2727_v56  ;;  %v3673_v29 = vld [vmem:[#allocation59_spill] sm:$0xff] }
 0x171   :  { %v1048_v24 = vmul.f32 %v948_v16, %v3672_v4  ;;  %v1149_v5 = vadd.f32 %v1148_v21, %v1047_v38  ;;  %v572_v18 = vmul.f32 1.442695, %v2733_v63  ;;  %v1043_v23 = vmul.f32 %v943_v44, %v3673_v29  ;;  %v3676_v37 = vld [vmem:[#allocation63_spill] sm:$0xff] }
 0x172   :  { %v775_v0 = vpop.permute.xlu2 %774  ;;  %v1044_v59 = vmul.f32 %v944_v62, %v3674_v8  ;;  %v1143_v40 = vadd.f32 %v1042_v60, %v1041_v15  ;;  %1695 = vpow2.f32 %v570_v27  ;;  %v3675_v8 = vld [vmem:[#allocation62_spill] sm:$0xff]  ;;  %v574_v44 = vmul.f32 1.442695, %v2752_v50 }
 0x173   :  { %vm853_vm0 = vcmp.eq.s32.totalorder %v2661_v58, %v775_v0  ;;  %vm854_vm1 = vcmp.eq.s32.totalorder %v2664_v42, %v775_v0  ;;  %vm855_vm2 = vcmp.eq.s32.totalorder %v2677_v1, %v775_v0  ;;  %v1150_v6 = vadd.f32 %v1149_v5, %v1048_v24 }
 0x174   :  { %v953_v61 = vsel %vm853_vm0, 0.9, %v3662_v33  ;;  %v954_v16 = vsel %vm854_vm1, 0.9, %v3662_v33  ;;  %v1144_v38 = vadd.f32 %v1143_v40, %v1043_v23  ;;  %vm856_vm3 = vcmp.eq.s32.totalorder %v2692_v19, %v775_v0  ;;  %v1756_v40 = vld [vmem:[#allocation2 + $0x318] sm:$0xff] }
 0x175   :  { %1151 = vadd.xlane.f32.xlu2 %v1150_v6  ;;  %v2765_v35 = vpop.permute.xlu0 %786  ;;  %v1053_v60 = vmul.f32 %v953_v61, %v3675_v8  ;;  %v1054_v21 = vmul.f32 %v954_v16, %v3676_v37  ;;  %1697 = vpow2.f32 %v572_v18  ;;  %v955_v24 = vsel %vm855_vm2, 0.9, %v3662_v33  ;;  %v3678_v61 = vld [vmem:[#allocation65_spill] sm:$0xff] }
 0x176   :  { %v772_v62 = vpop.permute.xlu1 %771  ;;  %v1145_v5 = vadd.f32 %v1144_v38, %v1044_v59  ;;  %v956_v23 = vsel %vm856_vm3, 0.9, %v3662_v33  ;;  %v2776_v15 = vsub.f32 %v1756_v40, %v2589_v34  ;;  %v3677_v59 = vld [vmem:[#allocation64_spill] sm:$0xff]  ;;  %1699 = vpow2.f32 %v574_v44  ;;  %v3679_v38 = vld [vmem:[#allocation53_spill] sm:$0xff]  ;;  %v3680_v34 = vld [vmem:[#allocation54_spill] sm:$0xff] }
 0x177   :  { %vm849_vm4 = vcmp.eq.s32.totalorder %v2661_v58, %v772_v62  ;;  %vm850_vm5 = vcmp.eq.s32.totalorder %v2664_v42, %v772_v62  ;;  %vm851_vm6 = vcmp.eq.s32.totalorder %v2677_v1, %v772_v62  ;;  %v1055_v18 = vmul.f32 %v955_v24, %v3677_v59 }
 0x178   :  { %v949_v27 = vsel %vm849_vm4, 0.9, %v3662_v33  ;;  %v950_v4 = vsel %vm850_vm5, 0.9, %v3662_v33  ;;  %1146 = vadd.xlane.f32.xlu0 %v1145_v5  ;;  %v1158_v0 = vadd.f32 %v1054_v21, %v1053_v60  ;;  %vm852_vm7 = vcmp.eq.s32.totalorder %v2692_v19, %v772_v62  ;;  %v1696_v8 = vpop.eup %1695  ;;  %v3681_v62 = vld [vmem:[#allocation55_spill] sm:$0xff] }
 0x179   :  { %v951_v29 = vsel %vm851_vm6, 0.9, %v3662_v33  ;;  %v1056_v16 = vmul.f32 %v956_v23, %v3678_v61  ;;  %v1049_v37 = vmul.f32 %v949_v27, %v3679_v38  ;;  %v1050_v40 = vmul.f32 %v950_v4, %v3680_v34  ;;  %v3682_v38 = vld [vmem:[#allocation56_spill] sm:$0xff] }
 0x17a   :  { %v781_v6 = vpop.permute.xlu2 %780  ;;  %v1159_v5 = vadd.f32 %v1158_v0, %v1055_v18  ;;  %v952_v60 = vsel %vm852_vm7, 0.9, %v3662_v33  ;;  %v1051_v24 = vmul.f32 %v951_v29, %v3681_v62  ;;  %v576_v27 = vmul.f32 1.442695, %v2776_v15 }
 0x17b   :  { %vm861_vm8 = vcmp.eq.s32.totalorder %v2661_v58, %v781_v6  ;;  %vm862_vm9 = vcmp.eq.s32.totalorder %v2664_v42, %v781_v6  ;;  %v1698_v21 = vpop.eup %1697  ;;  %vm863_vm10 = vcmp.eq.s32.totalorder %v2677_v1, %v781_v6  ;;  %v1153_v23 = vadd.f32 %v1050_v40, %v1049_v37 }
 0x17c   :  { %v961_v44 = vsel %vm861_vm8, 0.9, %v3662_v33  ;;  %v1160_v59 = vadd.f32 %v1159_v5, %v1056_v16  ;;  %v962_v61 = vsel %vm862_vm9, 0.9, %v3662_v33  ;;  %v1052_v18 = vmul.f32 %v952_v60, %v3682_v38  ;;  %v1700_v16 = vpop.eup %1699 }
 0x17d   :  { %v2793_v4 = vpop.permute.xlu0 %795  ;;  %v1154_v0 = vadd.f32 %v1153_v23, %v1051_v24  ;;  %vm864_vm11 = vcmp.eq.s32.totalorder %v2692_v19, %v781_v6  ;;  %v963_v29 = vsel %vm863_vm10, 0.9, %v3662_v33  ;;  %v1061_v37 = vmul.f32 %v961_v44, %v2284_v45 }
 0x17e   :  { %v778_v34 = vpop.permute.xlu1 %777  ;;  %1161 = vadd.xlane.f32.xlu2 %v1160_v59  ;;  %v698_v62 = vadd.f32 %v1698_v21, %v1696_v8  ;;  %1701 = vpow2.f32 %v576_v27  ;;  %vm869_vm15 = vcmp.eq.s32.totalorder %v2661_v58, %v2765_v35  ;;  %v1062_v60 = vmul.f32 %v962_v61, %v2288_v54 }
 0x17f   :  { %vm857_vm12 = vcmp.eq.s32.totalorder %v2661_v58, %v778_v34  ;;  %vm858_vm13 = vcmp.eq.s32.totalorder %v2664_v42, %v778_v34  ;;  %vm859_vm14 = vcmp.eq.s32.totalorder %v2677_v1, %v778_v34  ;;  %v1155_v5 = vadd.f32 %v1154_v0, %v1052_v18 }
 0x180   :  { %v957_v40 = vsel %vm857_vm12, 0.9, %v3662_v33  ;;  %v958_v38 = vsel %vm858_vm13, 0.9, %v3662_v33  ;;  %v964_v44 = vsel %vm864_vm11, 0.9, %v3662_v33  ;;  %v1063_v23 = vmul.f32 %v963_v29, %v2292_v31 }
 0x181   :  { %1156 = vadd.xlane.f32.xlu1 %v1155_v5  ;;  %vm860_vm0 = vcmp.eq.s32.totalorder %v2692_v19, %v778_v34  ;;  %v1057_v8 = vmul.f32 %v957_v40, %v2271_v12  ;;  %v1168_v21 = vadd.f32 %v1062_v60, %v1061_v37  ;;  %v959_v54 = vsel %vm859_vm14, 0.9, %v3662_v33 }
 0x182   :  { %v790_v24 = vpop.permute.xlu2 %789  ;;  %vm870_vm3 = vcmp.eq.s32.totalorder %v2664_v42, %v2765_v35  ;;  %v969_v6 = vsel %vm869_vm15, 0.9, %v3662_v33  ;;  %v1058_v31 = vmul.f32 %v958_v38, %v2274_v48  ;;  %v2823_v27 = vadd.f32 %v1700_v16, %v698_v62 }
 0x183   :  { %vm873_vm1 = vcmp.eq.s32.totalorder %v2661_v58, %v790_v24  ;;  %vm874_vm2 = vcmp.eq.s32.totalorder %v2664_v42, %v790_v24  ;;  %vm871_vm4 = vcmp.eq.s32.totalorder %v2677_v1, %v2765_v35  ;;  %vm875_vm5 = vcmp.eq.s32.totalorder %v2677_v1, %v790_v24 }
 0x184   :  { %v1064_v59 = vmul.f32 %v964_v44, %v2295_v3  ;;  %v1169_v61 = vadd.f32 %v1168_v21, %v1063_v23  ;;  %v960_v34 = vsel %vm860_vm0, 0.9, %v3662_v33  ;;  %v973_v18 = vsel %vm873_vm1, 0.9, %v3662_v33  ;;  %v2835_v40 = vpop.eup %1701 }
 0x185   :  { %v974_v0 = vsel %vm874_vm2, 0.9, %v3662_v33  ;;  %v1059_v37 = vmul.f32 %v959_v54, %v2277_v55  ;;  %v1163_v48 = vadd.f32 %v1058_v31, %v1057_v8  ;;  %v2833_v16 = vpop.permute.xlu0 %804  ;;  %vm876_vm8 = vcmp.eq.s32.totalorder %v2692_v19, %v790_v24 }
 0x186   :  { %v784_v29 = vpop.permute.xlu1 %783  ;;  %v1170_v3 = vadd.f32 %v1169_v61, %v1064_v59  ;;  %v970_v5 = vsel %vm870_vm3, 0.9, %v3662_v33  ;;  %v1060_v62 = vmul.f32 %v960_v34, %v2281_v26  ;;  %v975_v38 = vsel %vm875_vm5, 0.9, %v3662_v33  ;;  %v3683_v59 = vld [vmem:[#allocation71_spill] sm:$0xff] }
 0x187   :  { %vm865_vm6 = vcmp.eq.s32.totalorder %v2661_v58, %v784_v29  ;;  %vm866_vm7 = vcmp.eq.s32.totalorder %v2664_v42, %v784_v29  ;;  %v1164_v55 = vadd.f32 %v1163_v48, %v1059_v37  ;;  %vm881_vm9 = vcmp.eq.s32.totalorder %v2661_v58, %v2793_v4 }
 0x188   :  { %v965_v60 = vsel %vm865_vm6, 0.9, %v3662_v33  ;;  %v1073_v44 = vmul.f32 %v973_v18, %v2332_v28  ;;  %v1074_v23 = vmul.f32 %v974_v0, %v2338_v53  ;;  %vm867_vm10 = vcmp.eq.s32.totalorder %v2677_v1, %v784_v29 }
 0x189   :  { %v966_v8 = vsel %vm866_vm7, 0.9, %v3662_v33  ;;  %1171 = vadd.xlane.f32.xlu1 %v1170_v3  ;;  %v1165_v26 = vadd.f32 %v1164_v55, %v1060_v62  ;;  %v976_v54 = vsel %vm876_vm8, 0.9, %v3662_v33  ;;  %vm882_vm11 = vcmp.eq.s32.totalorder %v2664_v42, %v2793_v4 }
 0x18a   :  { %v799_v21 = vpop.permute.xlu2 %798  ;;  %vm893_vm12 = vcmp.eq.s32.totalorder %v2661_v58, %v2833_v16  ;;  %v1075_v24 = vmul.f32 %v975_v38, %v2343_v49  ;;  %v1183_v31 = vadd.f32 %v1074_v23, %v1073_v44  ;;  %v2862_v53 = vsel %vm881_vm9, 0.9, %v3662_v33  ;;  %v3684_v49 = vld [vmem:[#allocation72_spill] sm:$0xff] }
 0x18b   :  { %1166 = vadd.xlane.f32.xlu0 %v1165_v26  ;;  %vm894_vm13 = vcmp.eq.s32.totalorder %v2664_v42, %v2833_v16  ;;  %vm868_vm14 = vcmp.eq.s32.totalorder %v2692_v19, %v784_v29  ;;  %v1065_v61 = vmul.f32 %v965_v60, %v3683_v59  ;;  %v1076_v34 = vmul.f32 %v976_v54, %v2348_v57  ;;  %v3685_v60 = vld [vmem:[#allocation73_spill] sm:$0xff] }
 0x18c   :  { %v1184_v18 = vadd.f32 %v1183_v31, %v1075_v24  ;;  %v967_v0 = vsel %vm867_vm10, 0.9, %v3662_v33  ;;  %v1066_v37 = vmul.f32 %v966_v8, %v3684_v49  ;;  %v2874_v48 = vsel %vm882_vm11, 0.9, %v3662_v33  ;;  %v3686_v24 = vld [vmem:[#allocation80_spill] sm:$0xff]  ;;  %v3688_v49 = vld [vmem:[#allocation81_spill] sm:$0xff] }
 0x18d   :  { %v2877_v3 = vsel %vm893_vm12, 0.9, %v3662_v33  ;;  %vm885_vm15 = vcmp.eq.s32.totalorder %v2661_v58, %v799_v21  ;;  %vm872_vm0 = vcmp.eq.s32.totalorder %v2692_v19, %v2765_v35  ;;  %vm886_vm1 = vcmp.eq.s32.totalorder %v2664_v42, %v799_v21  ;;  %v2898_v26 = vpop.permute.xlu0 %813 }
 0x18e   :  { %v793_v62 = vpop.permute.xlu1 %792  ;;  %v1185_v57 = vadd.f32 %v1184_v18, %v1076_v34  ;;  %v968_v29 = vsel %vm868_vm14, 0.9, %v3662_v33  ;;  %v1069_v55 = vmul.f32 %v969_v6, %v2318_v7  ;;  %vm883_vm2 = vcmp.eq.s32.totalorder %v2677_v1, %v2793_v4 }
 0x18f   :  { %v2891_v38 = vsel %vm894_vm13, 0.9, %v3662_v33  ;;  %v1067_v44 = vmul.f32 %v967_v0, %v3685_v60  ;;  %v1173_v23 = vadd.f32 %v1066_v37, %v1065_v61  ;;  %v971_v8 = vsel %vm871_vm4, 0.9, %v3662_v33  ;;  %v3687_v61 = vld [vmem:[#allocation74_spill] sm:$0xff] }
 0x190   :  { %vm887_vm3 = vcmp.eq.s32.totalorder %v2677_v1, %v799_v21  ;;  %v985_v6 = vsel %vm885_vm15, 0.9, %v3662_v33  ;;  %v972_v54 = vsel %vm872_vm0, 0.9, %v3662_v33  ;;  %v1070_v31 = vmul.f32 %v970_v5, %v3686_v24  ;;  %v3689_v24 = vld [vmem:[#allocation82_spill] sm:$0xff] }
 0x191   :  { %v986_v34 = vsel %vm886_vm1, 0.9, %v3662_v33  ;;  %vm877_vm5 = vcmp.eq.s32.totalorder %v2661_v58, %v793_v62  ;;  %1186 = vadd.xlane.f32.xlu1 %v1185_v57  ;;  %v1068_v18 = vmul.f32 %v968_v29, %v3687_v61  ;;  %v1174_v0 = vadd.f32 %v1173_v23, %v1067_v44  ;;  %v3690_v44 = vld [vmem:[#allocation17_spill] sm:$0xff]  ;;  %v3691_v61 = vld [vmem:[#allocation20_spill] sm:$0xff] }
 0x192   :  { %v2907_v35 = vpop.permute.xlu2 %807  ;;  %vm878_vm4 = vcmp.eq.s32.totalorder %v2664_v42, %v793_v62  ;;  %v1071_v37 = vmul.f32 %v971_v8, %v3688_v49  ;;  %v1178_v60 = vadd.f32 %v1070_v31, %v1069_v55  ;;  %vm905_vm6 = vcmp.eq.s32.totalorder %v2661_v58, %v2898_v26  ;;  %v3692_v49 = vld [vmem:[#allocation27_spill] sm:$0xff] }
 0x193   :  { %vm879_vm7 = vcmp.eq.s32.totalorder %v2677_v1, %v793_v62  ;;  %v1175_v5 = vadd.f32 %v1174_v0, %v1068_v18  ;;  %v1072_v7 = vmul.f32 %v972_v54, %v3689_v24  ;;  %vm906_vm8 = vcmp.eq.s32.totalorder %v2664_v42, %v2898_v26  ;;  %v3694_v24 = vld [vmem:[#allocation76_spill] sm:$0xff] }
 0x194   :  { %v1179_v57 = vadd.f32 %v1178_v60, %v1071_v37  ;;  %vm888_vm9 = vcmp.eq.s32.totalorder %v2692_v19, %v799_v21  ;;  %v987_v29 = vsel %vm887_vm3, 0.9, %v3662_v33  ;;  %v1085_v55 = vmul.f32 %v985_v6, %v3690_v44 }
 0x195   :  { %v977_v23 = vsel %vm877_vm5, 0.9, %v3662_v33  ;;  %v978_v8 = vsel %vm878_vm4, 0.9, %v3662_v33  ;;  %1176 = vadd.xlane.f32.xlu2 %v1175_v5  ;;  %v2927_v54 = vsel %vm905_vm6, 0.9, %v3662_v33  ;;  %v1086_v18 = vmul.f32 %v986_v34, %v3691_v61 }
 0x196   :  { %v2929_v31 = vpop.permute.xlu1 %801  ;;  %v1180_v0 = vadd.f32 %v1179_v57, %v1072_v7  ;;  %v2933_v21 = vsel %vm906_vm8, 0.9, %v3662_v33  ;;  %v988_v6 = vsel %vm888_vm9, 0.9, %v3662_v33  ;;  %vm880_vm10 = vcmp.eq.s32.totalorder %v2692_v19, %v793_v62  ;;  %v3693_v34 = vld [vmem:[#allocation75_spill] sm:$0xff]  ;;  %v3695_v61 = vld [vmem:[#allocation14_spill] sm:$0xff] }
 0x197   :  { %vm897_vm11 = vcmp.eq.s32.totalorder %v2661_v58, %v2907_v35  ;;  %vm898_vm12 = vcmp.eq.s32.totalorder %v2664_v42, %v2907_v35  ;;  %v1087_v37 = vmul.f32 %v987_v29, %v3692_v49  ;;  %v1198_v60 = vadd.f32 %v1086_v18, %v1085_v55  ;;  %v3696_v29 = vld [vmem:[#allocation77_spill] sm:$0xff] }
 0x198   :  { %1181 = vadd.xlane.f32.xlu0 %v1180_v0  ;;  %vm899_vm13 = vcmp.eq.s32.totalorder %v2677_v1, %v2907_v35  ;;  %v979_v7 = vsel %vm879_vm7, 0.9, %v3662_v33  ;;  %v1077_v5 = vmul.f32 %v977_v23, %v3693_v34  ;;  %v1078_v57 = vmul.f32 %v978_v8, %v3694_v24  ;;  %v3697_v23 = vld [vmem:[#allocation12_spill] sm:$0xff]  ;;  %v2962_v0 = vpop.permute.xlu0 %822 }
 0x199   :  { %v1088_v44 = vmul.f32 %v988_v6, %v3695_v61  ;;  %v1199_v59 = vadd.f32 %v1198_v60, %v1087_v37  ;;  %v980_v28 = vsel %vm880_vm10, 0.9, %v3662_v33  ;;  %vm884_vm14 = vcmp.eq.s32.totalorder %v2692_v19, %v2793_v4  ;;  %v3698_v37 = vld [vmem:[#allocation18_spill] sm:$0xff] }
 0x19a   :  { %vm895_vm15 = vcmp.eq.s32.totalorder %v2677_v1, %v2833_v16  ;;  %v1079_v55 = vmul.f32 %v979_v7, %v3696_v29  ;;  %v1188_v18 = vadd.f32 %v1078_v57, %v1077_v5  ;;  %v983_v62 = vsel %vm883_vm2, 0.9, %v3662_v33  ;;  %v2972_v7 = vpop.permute.xlu2 %816  ;;  %v3699_v4 = vld [vmem:[#allocation78_spill] sm:$0xff]  ;;  %v3700_v57 = vld [vmem:[#allocation21_spill] sm:$0xff] }
 0x19b   :  { %v1081_v8 = vmul.f32 %v2862_v53, %v3697_v23  ;;  %v997_v6 = vsel %vm897_vm11, 0.9, %v3662_v33  ;;  %vm889_vm0 = vcmp.eq.s32.totalorder %v2661_v58, %v2929_v31  ;;  %v1200_v49 = vadd.f32 %v1199_v59, %v1088_v44 }
 0x19c   :  { %v1082_v60 = vmul.f32 %v2874_v48, %v3698_v37  ;;  %vm890_vm1 = vcmp.eq.s32.totalorder %v2664_v42, %v2929_v31  ;;  %v1080_v53 = vmul.f32 %v980_v28, %v3699_v4  ;;  %v1189_v5 = vadd.f32 %v1188_v18, %v1079_v55  ;;  %v3701_v55 = vld [vmem:[#allocation16_spill] sm:$0xff] }
 0x19d   :  { %v984_v24 = vsel %vm884_vm14, 0.9, %v3662_v33  ;;  %1201 = vadd.xlane.f32.xlu1 %v1200_v49  ;;  %v1083_v61 = vmul.f32 %v983_v62, %v3700_v57  ;;  %vm917_vm2 = vcmp.eq.s32.totalorder %v2661_v58, %v2962_v0  ;;  %vm918_vm3 = vcmp.eq.s32.totalorder %v2664_v42, %v2962_v0 }
 0x19e   :  { %v1193_v29 = vadd.f32 %v1082_v60, %v1081_v8  ;;  %v998_v59 = vsel %vm898_vm12, 0.9, %v3662_v33  ;;  %vm891_vm5 = vcmp.eq.s32.totalorder %v2677_v1, %v2929_v31  ;;  %v1190_v28 = vadd.f32 %v1189_v5, %v1080_v53  ;;  %v2991_v48 = vpop.permute.xlu1 %810 }
 0x19f   :  { %vm909_vm4 = vcmp.eq.s32.totalorder %v2661_v58, %v2972_v7  ;;  %v989_v44 = vsel %vm889_vm0, 0.9, %v3662_v33  ;;  %v1084_v18 = vmul.f32 %v984_v24, %v3701_v55  ;;  %vm910_vm6 = vcmp.eq.s32.totalorder %v2664_v42, %v2972_v7 }
 0x1a0   :  { %v1194_v62 = vadd.f32 %v1193_v29, %v1083_v61  ;;  %v990_v8 = vsel %vm890_vm1, 0.9, %v3662_v33  ;;  %1191 = vadd.xlane.f32.xlu2 %v1190_v28  ;;  %v3005_v49 = vsel %vm917_vm2, 0.9, %v3662_v33  ;;  %v3008_v37 = vsel %vm918_vm3, 0.9, %v3662_v33 }
 0x1a1   :  { %vm900_vm7 = vcmp.eq.s32.totalorder %v2692_v19, %v2907_v35  ;;  %vm911_vm8 = vcmp.eq.s32.totalorder %v2677_v1, %v2972_v7  ;;  %v1009_v4 = vsel %vm909_vm4, 0.9, %v3662_v33  ;;  %v999_v53 = vsel %vm899_vm13, 0.9, %v3662_v33  ;;  %v3702_v29 = vld [vmem:[#allocation9_spill] sm:$0xff]  ;;  %v3703_v28 = vld [vmem:[#allocation10_spill] sm:$0xff] }
 0x1a2   :  { %v1195_v60 = vadd.f32 %v1194_v62, %v1084_v18  ;;  %v1097_v5 = vmul.f32 %v997_v6, %v2444_v13  ;;  %v1010_v24 = vsel %vm910_vm6, 0.9, %v3662_v33  ;;  %vm901_vm9 = vcmp.eq.s32.totalorder %v2661_v58, %v2991_v48 }
 0x1a3   :  { %v1098_v57 = vmul.f32 %v998_v59, %v2447_v2  ;;  %vm892_vm10 = vcmp.eq.s32.totalorder %v2692_v19, %v2929_v31  ;;  %v1000_v61 = vsel %vm900_vm7, 0.9, %v3662_v33  ;;  %v991_v35 = vsel %vm891_vm5, 0.9, %v3662_v33  ;;  %v3037_v59 = vpop.permute.xlu0 %831 }
 0x1a4   :  { %1196 = vadd.xlane.f32.xlu0 %v1195_v60  ;;  %v1089_v6 = vmul.f32 %v989_v44, %v3702_v29  ;;  %v1090_v55 = vmul.f32 %v990_v8, %v3703_v28  ;;  %v1099_v18 = vmul.f32 %v999_v53, %v2452_v20  ;;  %v992_v2 = vsel %vm892_vm10, 0.9, %v3662_v33  ;;  %v3704_v60 = vld [vmem:[#allocation13_spill] sm:$0xff]  ;;  %v3705_v20 = vld [vmem:[#allocation23_spill] sm:$0xff]  ;;  %v3053_v29 = vpop.permute.xlu2 %825 }
 0x1a5   :  { %v1213_v62 = vadd.f32 %v1098_v57, %v1097_v5  ;;  %vm896_vm11 = vcmp.eq.s32.totalorder %v2692_v19, %v2833_v16  ;;  %vm907_vm12 = vcmp.eq.s32.totalorder %v2677_v1, %v2898_v26  ;;  %v1091_v31 = vmul.f32 %v991_v35, %v3704_v60  ;;  %v3706_v57 = vld [vmem:[#allocation30_spill] sm:$0xff]  ;;  %v3707_v35 = vld [vmem:[#allocation11_spill] sm:$0xff]  ;;  %v3708_v60 = vld [vmem:[#allocation33_spill] sm:$0xff] }
 0x1a6   :  { %v1203_v13 = vadd.f32 %v1090_v55, %v1089_v6  ;;  %v995_v44 = vsel %vm895_vm15, 0.9, %v3662_v33  ;;  %v1093_v8 = vmul.f32 %v2877_v3, %v3705_v20  ;;  %vm902_vm13 = vcmp.eq.s32.totalorder %v2664_v42, %v2991_v48 }
 0x1a7   :  { %v1100_v53 = vmul.f32 %v1000_v61, %v2455_v11  ;;  %v1214_v5 = vadd.f32 %v1213_v62, %v1099_v18  ;;  %v1094_v28 = vmul.f32 %v2891_v38, %v3706_v57  ;;  %v1092_v6 = vmul.f32 %v992_v2, %v3707_v35  ;;  %v3062_v11 = vpop.permute.xlu1 %819  ;;  %v3709_v18 = vld [vmem:[#allocation28_spill] sm:$0xff] }
 0x1a8   :  { %v1204_v55 = vadd.f32 %v1203_v13, %v1091_v31  ;;  %v996_v16 = vsel %vm896_vm11, 0.9, %v3662_v33  ;;  %vm929_vm14 = vcmp.eq.s32.totalorder %v2661_v58, %v3037_v59  ;;  %v1095_v20 = vmul.f32 %v995_v44, %v3708_v60 }
 0x1a9   :  { %v1215_v3 = vadd.f32 %v1214_v5, %v1100_v53  ;;  %v1208_v23 = vadd.f32 %v1094_v28, %v1093_v8  ;;  %vm930_vm15 = vcmp.eq.s32.totalorder %v2664_v42, %v3037_v59  ;;  %vm903_vm0 = vcmp.eq.s32.totalorder %v2677_v1, %v2991_v48 }
 0x1aa   :  { %v1001_v13 = vsel %vm901_vm9, 0.9, %v3662_v33  ;;  %v1205_v38 = vadd.f32 %v1204_v55, %v1092_v6  ;;  %vm921_vm1 = vcmp.eq.s32.totalorder %v2661_v58, %v3053_v29  ;;  %v1002_v61 = vsel %vm902_vm13, 0.9, %v3662_v33  ;;  %v3711_v6 = vld [vmem:[#allocation19_spill] sm:$0xff] }
 0x1ab   :  { %1216 = vadd.xlane.f32.xlu1 %v1215_v3  ;;  %v1096_v62 = vmul.f32 %v996_v16, %v3709_v18  ;;  %v1209_v2 = vadd.f32 %v1208_v23, %v1095_v20  ;;  %v3078_v31 = vsel %vm929_vm14, 0.9, %v3662_v33  ;;  %v3081_v44 = vsel %vm930_vm15, 0.9, %v3662_v33  ;;  %v3712_v3 = vld [vmem:[#allocation24_spill] sm:$0xff] }
 0x1ac   :  { %1206 = vadd.xlane.f32.xlu2 %v1205_v38  ;;  %vm922_vm2 = vcmp.eq.s32.totalorder %v2664_v42, %v3053_v29  ;;  %v3086_v8 = vsel %vm921_vm1, 0.9, %v3662_v33  ;;  %vm912_vm3 = vcmp.eq.s32.totalorder %v2692_v19, %v2972_v7  ;;  %vm919_vm5 = vcmp.eq.s32.totalorder %v2677_v1, %v2962_v0  ;;  %v3710_v7 = vld [vmem:[#allocation15_spill] sm:$0xff] }
 0x1ad   :  { %v1210_v23 = vadd.f32 %v1209_v2, %v1096_v62  ;;  %vm913_vm4 = vcmp.eq.s32.totalorder %v2661_v58, %v3062_v11  ;;  %vm914_vm6 = vcmp.eq.s32.totalorder %v2664_v42, %v3062_v11  ;;  %v1011_v20 = vsel %vm911_vm8, 0.9, %v3662_v33  ;;  %v3714_v2 = vld [vmem:[#allocation22_spill] sm:$0xff] }
 0x1ae   :  { %vm915_vm7 = vcmp.eq.s32.totalorder %v2677_v1, %v3062_v11  ;;  %v1012_v53 = vsel %vm912_vm3, 0.9, %v3662_v33  ;;  %v1109_v5 = vmul.f32 %v1009_v4, %v2493_v22  ;;  %v1110_v57 = vmul.f32 %v1010_v24, %v2496_v51 }
 0x1af   :  { %1211 = vadd.xlane.f32.xlu0 %v1210_v23  ;;  %vm904_vm9 = vcmp.eq.s32.totalorder %v2692_v19, %v2991_v48  ;;  %v1003_v28 = vsel %vm903_vm0, 0.9, %v3662_v33  ;;  %v1101_v35 = vmul.f32 %v1001_v13, %v3710_v7  ;;  %v1102_v55 = vmul.f32 %v1002_v61, %v3711_v6 }
 0x1b0   :  { %vm923_vm8 = vcmp.eq.s32.totalorder %v2677_v1, %v3053_v29  ;;  %v1111_v4 = vmul.f32 %v1011_v20, %v2500_v14  ;;  %v1228_v16 = vadd.f32 %v1110_v57, %v1109_v5  ;;  %v1004_v51 = vsel %vm904_vm9, 0.9, %v3662_v33  ;;  %v3713_v14 = vld [vmem:[#allocation31_spill] sm:$0xff] }
 0x1b1   :  { %vm908_vm10 = vcmp.eq.s32.totalorder %v2692_v19, %v2898_v26  ;;  %v1112_v24 = vmul.f32 %v1012_v53, %v2503_v10  ;;  %v1103_v48 = vmul.f32 %v1003_v28, %v3712_v3  ;;  %v1218_v60 = vadd.f32 %v1102_v55, %v1101_v35  ;;  %v829_v53 = vpop.permute.xlu1 %828  ;;  %v3715_v28 = vld [vmem:[#allocation36_spill] sm:$0xff]  ;;  %v3718_v3 = vld [vmem:[#allocation25_spill] sm:$0xff] }
 0x1b2   :  { %v1007_v13 = vsel %vm907_vm12, 0.9, %v3662_v33  ;;  %v1229_v38 = vadd.f32 %v1228_v16, %v1111_v4  ;;  %v1008_v61 = vsel %vm908_vm10, 0.9, %v3662_v33  ;;  %v1105_v18 = vmul.f32 %v2927_v54, %v3713_v14  ;;  %v3716_v4 = vld [vmem:[#allocation32_spill] sm:$0xff] }
 0x1b3   :  { %v1106_v62 = vmul.f32 %v2933_v21, %v2477_v9  ;;  %v1013_v10 = vsel %vm913_vm4, 0.9, %v3662_v33  ;;  %v1014_v26 = vsel %vm914_vm6, 0.9, %v3662_v33  ;;  %v1104_v23 = vmul.f32 %v1004_v51, %v3714_v2  ;;  %v3717_v51 = vld [vmem:[#allocation39_spill] sm:$0xff] }
 0x1b4   :  { %v1219_v20 = vadd.f32 %v1218_v60, %v1103_v48  ;;  %vm931_vm11 = vcmp.eq.s32.totalorder %v2677_v1, %v3037_v59  ;;  %v1022_v9 = vsel %vm922_vm2, 0.9, %v3662_v33  ;;  %v1230_v54 = vadd.f32 %v1229_v38, %v1112_v24 }
 0x1b5   :  { %v1107_v21 = vmul.f32 %v1007_v13, %v2481_v41  ;;  %v1223_v5 = vadd.f32 %v1106_v62, %v1105_v18  ;;  %v1108_v35 = vmul.f32 %v1008_v61, %v3715_v28  ;;  %vm916_vm12 = vcmp.eq.s32.totalorder %v2692_v19, %v3062_v11 }
 0x1b6   :  { %v1220_v57 = vadd.f32 %v1219_v20, %v1104_v23  ;;  %v1015_v6 = vsel %vm915_vm7, 0.9, %v3662_v33  ;;  %1231 = vadd.xlane.f32.xlu1 %v1230_v54  ;;  %vm925_vm13 = vcmp.eq.s32.totalorder %v2661_v58, %v829_v53  ;;  %v1113_v16 = vmul.f32 %v1013_v10, %v3716_v4  ;;  %v3719_v10 = vld [vmem:[#allocation26_spill] sm:$0xff] }
 0x1b7   :  { %v1224_v55 = vadd.f32 %v1223_v5, %v1107_v21  ;;  %v1114_v41 = vmul.f32 %v1014_v26, %v3717_v51  ;;  %vm926_vm14 = vcmp.eq.s32.totalorder %v2664_v42, %v829_v53  ;;  %v1016_v24 = vsel %vm916_vm12, 0.9, %v3662_v33 }
 0x1b8   :  { %1221 = vadd.xlane.f32.xlu2 %v1220_v57  ;;  %v1115_v48 = vmul.f32 %v1015_v6, %v3718_v3  ;;  %vm920_vm15 = vcmp.eq.s32.totalorder %v2692_v19, %v2962_v0  ;;  %v1019_v13 = vsel %vm919_vm5, 0.9, %v3662_v33  ;;  %v1117_v38 = vmul.f32 %v3005_v49, %v2522_v43 }
 0x1b9   :  { %v1225_v11 = vadd.f32 %v1224_v55, %v1108_v35  ;;  %v1233_v60 = vadd.f32 %v1114_v41, %v1113_v16  ;;  %vm927_vm0 = vcmp.eq.s32.totalorder %v2677_v1, %v829_v53  ;;  %v1025_v42 = vsel %vm925_vm13, 0.9, %v3662_v33  ;;  %v3720_v35 = vld [vmem:[#allocation34_spill] sm:$0xff]  ;;  %v3722_v41 = vld [vmem:[#allocation35_spill] sm:$0xff] }
 0x1ba   :  { %v1020_v61 = vsel %vm920_vm15, 0.9, %v3662_v33  ;;  %v1118_v18 = vmul.f32 %v3008_v37, %v2528_v17  ;;  %v1026_v62 = vsel %vm926_vm14, 0.9, %v3662_v33  ;;  %v1116_v26 = vmul.f32 %v1016_v24, %v3719_v10  ;;  %v3721_v16 = vld [vmem:[#allocation42_spill] sm:$0xff] }
 0x1bb   :  { %1226 = vadd.xlane.f32.xlu0 %v1225_v11  ;;  %v1234_v2 = vadd.f32 %v1233_v60, %v1115_v48  ;;  %v1121_v0 = vmul.f32 %v3086_v8, %v2539_v36  ;;  %v1119_v49 = vmul.f32 %v1019_v13, %v2532_v47  ;;  %v1023_v20 = vsel %vm923_vm8, 0.9, %v3662_v33  ;;  %v3723_v11 = vld [vmem:[#allocation40_spill] sm:$0xff]  ;;  %v3724_v60 = vld [vmem:[#allocation37_spill] sm:$0xff] }
 0x1bc   :  { %v1238_v23 = vadd.f32 %v1118_v18, %v1117_v38  ;;  %v1122_v54 = vmul.f32 %v1022_v9, %v2543_v32  ;;  %v1120_v37 = vmul.f32 %v1020_v61, %v2535_v39  ;;  %vm924_vm1 = vcmp.eq.s32.totalorder %v2692_v19, %v3053_v29 }
 0x1bd   :  { %v1235_v17 = vadd.f32 %v1234_v2, %v1116_v26  ;;  %v1125_v21 = vmul.f32 %v1025_v42, %v2507_v52  ;;  %v1027_v47 = vsel %vm927_vm0, 0.9, %v3662_v33  ;;  %v1126_v57 = vmul.f32 %v1026_v62, %v2511_v30  ;;  %v3726_v62 = vld [vmem:[#allocation61_spill] sm:$0xff] }
 0x1be   :  { %v1239_v5 = vadd.f32 %v1238_v23, %v1119_v49  ;;  %v1243_v8 = vadd.f32 %v1122_v54, %v1121_v0  ;;  %v700_v28 = vadd.f32 %v2835_v40, %v2823_v27  ;;  %v1123_v32 = vmul.f32 %v1023_v20, %v2547_v46  ;;  %v1757_v49 = vld [vmem:[%s3367_s1 + $0x8] sm:$0xff]  ;;  %v1758_v54 = vld [vmem:[%s3367_s1] sm:$0xff] }
 0x1bf   :  { %vm928_vm2 = vcmp.eq.s32.totalorder %v2692_v19, %v829_v53  ;;  %v1248_v29 = vadd.f32 %v1126_v57, %v1125_v21  ;;  %vm932_vm3 = vcmp.eq.s32.totalorder %v2692_v19, %v3037_v59  ;;  %v1031_v9 = vsel %vm931_vm11, 0.9, %v3662_v33 }
 0x1c0   :  { %1236 = vadd.xlane.f32.xlu2 %v1235_v17  ;;  %v1240_v39 = vadd.f32 %v1239_v5, %v1120_v37  ;;  %v1024_v30 = vsel %vm924_vm1, 0.9, %v3662_v33  ;;  %v1127_v6 = vmul.f32 %v1027_v47, %v3720_v35  ;;  %v1129_v46 = vmul.f32 %v3078_v31, %v2727_v56  ;;  %v3727_v17 = vld [vmem:[#allocation47_spill] sm:$0xff] }
 0x1c1   :  { %v1130_v27 = vmul.f32 %v3081_v44, %v2733_v63  ;;  %v1244_v40 = vadd.f32 %v1243_v8, %v1123_v32  ;;  %v1028_v53 = vsel %vm928_vm2, 0.9, %v3662_v33  ;;  %v1032_v55 = vsel %vm932_vm3, 0.9, %v3662_v33  ;;  %v3728_v8 = vld [vmem:[#allocation41_spill] sm:$0xff] }
 0x1c2   :  { %1241 = vadd.xlane.f32.xlu1 %v1240_v39  ;;  %v1249_v19 = vadd.f32 %v1248_v29, %v1127_v6  ;;  %v1131_v1 = vmul.f32 %v1031_v9, %v2752_v50  ;;  %v1124_v51 = vmul.f32 %v1024_v30, %v3721_v16  ;;  %v1128_v24 = vmul.f32 %v1028_v53, %v3722_v41  ;;  %v3725_v50 = vld [vmem:[#allocation70_spill] sm:$0xff]  ;;  %v1760_v41 = vld [vmem:[%s3367_s1 + $0x10] sm:$0xff] }
 0x1c3   :  { %701 = vadd.xlane.f32.xlu0 %v700_v28  ;;  %v1253_v59 = vadd.f32 %v1130_v27, %v1129_v46  ;;  %v1132_v48 = vmul.f32 %v1032_v55, %v2776_v15  ;;  %1703 = vlog2.f32 %v3723_v11  ;;  %v1259_v13 = vmul.f32 0.00019607843, %v3725_v50  ;;  %v3729_v39 = vld [vmem:[#allocation66_spill] sm:$0xff] }
 0x1c4   :  { %v1245_v31 = vadd.f32 %v1244_v40, %v1124_v51  ;;  %v1250_v63 = vadd.f32 %v1249_v19, %v1128_v24  ;;  %1705 = vlog2.f32 %v3724_v60  ;;  %v1258_v10 = vmul.f32 0.00019607843, %v3726_v62  ;;  %v3730_v46 = vld [vmem:[#allocation38_spill] sm:$0xff] }
 0x1c5   :  { %v1254_v3 = vadd.f32 %v1253_v59, %v1131_v1  ;;  %vm1359_vm5 = vcmp.eq.s32.totalorder %v1757_v49, 0  ;;  %vm1358_vm4 = vcmp.eq.s32.totalorder %v1758_v54, 0  ;;  %1707 = vlog2.f32 %v3727_v17  ;;  %v1759_v19 = vld [vmem:[%s3367_s1 + $0x18] sm:$0xff]  ;;  %v3731_v59 = vld [vmem:[#allocation44_spill] sm:$0xff]  ;;  %v1762_v54 = vld [vmem:[%s3367_s1 + $0x20] sm:$0xff] }
 0x1c6   :  { %vm1408_vm6 = vcmask 7168   ;;  %1709 = vlog2.f32 %v3728_v8  ;;  %v1261_v29 = vmul.f32 0.00019607843, %v3729_v39  ;;  %v1260_v27 = vmul.f32 0.00019607843, %v3670_v25  ;;  %v3735_v49 = vld [vmem:[#allocation52_spill] sm:$0xff] }
 0x1c7   :  { %v1255_v44 = vadd.f32 %v1254_v3, %v1132_v48  ;;  %1711 = vlog2.f32 %v3730_v46  ;;  %vm1361_vm7 = vcmp.eq.s32.totalorder %v1759_v19, 0  ;;  %vm1360_vm9 = vcmp.eq.s32.totalorder %v1760_v41, 0  ;;  %v3737_v19 = vld [vmem:[#allocation45_spill] sm:$0xff] }
 0x1c8   :  { %1246 = vadd.xlane.f32.xlu2 %v1245_v31  ;;  %1713 = vlog2.f32 %v3731_v59  ;;  %v3732_v31 = vld [vmem:[#allocation62_spill] sm:$0xff]  ;;  %vm1362_vm10 = vcmp.eq.s32.totalorder %v1762_v54, 0  ;;  %v1265_v8 = vmul.f32 0.00019607843, %v2284_v45 }
 0x1c9   :  { %v1704_v33 = vpop.eup %1703  ;;  %v1263_v48 = vmul.f32 0.00019607843, %v3732_v31  ;;  %v1763_v45 = vld [vmem:[%s3367_s1 + $0x38] sm:$0xff] }
 0x1ca   :  { %1256 = vadd.xlane.f32.xlu1 %v1255_v44  ;;  %v1706_v38 = vpop.eup %1705  ;;  %v706_v61 = vmul.f32 0.6931472, %v1704_v33  ;;  %vm1365_vm11 = vcmp.eq.s32.totalorder %v1763_v45, 0 }
 0x1cb   :  { %1251 = vadd.xlane.f32.xlu0 %v1250_v63  ;;  %v704_v15 = vmul.f32 0.6931472, %v1706_v38  ;;  %v1708_v32 = vpop.eup %1707  ;;  %v3733_v38 = vld [vmem:[#allocation53_spill] sm:$0xff] }
 0x1cc   :  { %v1710_v30 = vpop.eup %1709  ;;  %v710_v35 = vmul.f32 0.6931472, %v1708_v32 }
 0x1cd   :  { %v708_v55 = vmul.f32 0.6931472, %v1710_v30  ;;  %v1712_v25 = vpop.eup %1711  ;;  %v1264_v30 = vmul.f32 0.00019607843, %v2271_v12  ;;  %v1764_v12 = vld [vmem:[%s3367_s1 + $0x30] sm:$0xff] }
 0x1ce   :  { %v1714_v11 = vpop.eup %1713  ;;  %v714_v60 = vmul.f32 0.6931472, %v1712_v25  ;;  %vm1364_vm12 = vcmp.eq.s32.totalorder %v1764_v12, 0 }
 0x1d9   :  { %v1142_v42 = vpop.xlane.xlu1 %1141 }
 0x1da   :  { %v1284_v18 = vsub.f32 %v1142_v42, %v1259_v13  ;;  %v1262_v42 = vmul.f32 0.00019607843, %v3733_v38  ;;  %v1765_v38 = vld [vmem:[%s3367_s1 + $0x50] sm:$0xff] }
 0x1db   :  { %v1137_v26 = vpop.xlane.xlu2 %1136  ;;  %vm1368_vm13 = vcmp.eq.s32.totalorder %v1765_v38, 0 }
 0x1dc   :  { %v1309_v2 = vsub.f32 %v1284_v18, %v706_v61  ;;  %v1283_v0 = vsub.f32 %v1137_v26, %v1258_v10  ;;  %v3734_v61 = vld [vmem:[#allocation43_spill] sm:$0xff]  ;;  %v1761_v26 = vld [vmem:[%s3367_s1 + $0x28] sm:$0xff] }
 0x1dd   :  { %1715 = vlog2.f32 %v3734_v61  ;;  %vm1363_vm8 = vcmp.eq.s32.totalorder %v1761_v26, 0 }
 0x1de   :  { %v1334_v23 = vsub.f32 0.0, %v1309_v2  ;;  %v1308_v20 = vsub.f32 %v1283_v0, %v704_v15  ;;  %v712_v15 = vmul.f32 0.6931472, %v1714_v11  ;;  %1717 = vlog2.f32 %v3735_v49 }
 0x1e0   :  { %v1384_v37 = vsel %vm1359_vm5, 0.0, %v1334_v23  ;;  %v1333_v21 = vsub.f32 0.0, %v1308_v20 }
 0x1e1   :  { %v1410_v47 = vsel %vm1408_vm6, %v1384_v37, 0.0 }
 0x1e2   :  { %v1383_v5 = vsel %vm1358_vm4, 0.0, %v1333_v21 }
 0x1e3   :  { %v1409_v57 = vsel %vm1408_vm6, %v1383_v5, 0.0  ;;  %v1716_v21 = vpop.eup %1715 }
 0x1e4   :  { %v1411_v28 = vadd.f32 %v1410_v47, %v1409_v57  ;;  %v1718_v47 = vpop.eup %1717  ;;  %v3736_v57 = vld [vmem:[#allocation46_spill] sm:$0xff]  ;;  %v718_v39 = vmul.f32 0.6931472, %v1716_v21 }
 0x1e5   :  { %1719 = vlog2.f32 %v3736_v57  ;;  %v716_v46 = vmul.f32 0.6931472, %v1718_v47  ;;  %v3744_v57 = vld [vmem:[#allocation84_spill] sm:$0xff] }
 0x1e6   :  { %1721 = vlog2.f32 %v3737_v19  ;;  %v1269_v19 = vmul.f32 0.00019607843, %v3693_v34 }
 0x1e8   :  { %v1152_v9 = vpop.xlane.xlu2 %1151 }
 0x1e9   :  { %v1286_v6 = vsub.f32 %v1152_v9, %v1261_v29 }
 0x1eb   :  { %v1311_v40 = vsub.f32 %v1286_v6, %v710_v35  ;;  %v1147_v53 = vpop.xlane.xlu0 %1146  ;;  %v1720_v59 = vpop.eup %1719 }
 0x1ec   :  { %v1285_v1 = vsub.f32 %v1147_v53, %v1260_v27  ;;  %v724_v31 = vmul.f32 0.6931472, %v1720_v59 }
 0x1ed   :  { %v1336_v16 = vsub.f32 0.0, %v1311_v40 }
 0x1ee   :  { %v1310_v51 = vsub.f32 %v1285_v1, %v708_v55 }
 0x1ef   :  { %v1386_v24 = vsel %vm1361_vm7, 0.0, %v1336_v16  ;;  %v3738_v16 = vld [vmem:[#allocation50_spill] sm:$0xff] }
 0x1f0   :  { %v1335_v3 = vsub.f32 0.0, %v1310_v51  ;;  %v1414_v18 = vsel %vm1408_vm6, %v1386_v24, 0.0  ;;  %1723 = vlog2.f32 %v3738_v16  ;;  %v3739_v24 = vld [vmem:[#allocation8_spill] sm:$0xff] }
 0x1f1   :  { %v1162_v44 = vpop.xlane.xlu2 %1161  ;;  %v1268_v25 = vmul.f32 0.00019607843, %v3739_v24  ;;  %v1768_v16 = vld [vmem:[%s3367_s1 + $0x68] sm:$0xff] }
 0x1f2   :  { %v1385_v63 = vsel %vm1360_vm9, 0.0, %v1335_v3  ;;  %v1288_v50 = vsub.f32 %v1162_v44, %v1263_v48  ;;  %v1722_v44 = vpop.eup %1721  ;;  %vm1371_vm0 = vcmp.eq.s32.totalorder %v1768_v16, 0 }
 0x1f3   :  { %v1412_v33 = vsel %vm1408_vm6, %v1385_v63, 0.0 }
 0x1f4   :  { %v1413_v13 = vadd.f32 %v1412_v33, %v1411_v28  ;;  %v1313_v62 = vsub.f32 %v1288_v50, %v714_v60  ;;  %v1157_v10 = vpop.xlane.xlu1 %1156  ;;  %v3740_v33 = vld [vmem:[#allocation71_spill] sm:$0xff] }
 0x1f5   :  { %v1287_v2 = vsub.f32 %v1157_v10, %v1262_v42  ;;  %v1266_v50 = vmul.f32 0.00019607843, %v3740_v33  ;;  %v3741_v42 = vld [vmem:[#allocation49_spill] sm:$0xff]  ;;  %v720_v10 = vmul.f32 0.6931472, %v1722_v44  ;;  %v1769_v33 = vld [vmem:[%s3367_s1 + $0x58] sm:$0xff] }
 0x1f6   :  { %v1415_v0 = vadd.f32 %v1414_v18, %v1413_v13  ;;  %v1338_v23 = vsub.f32 0.0, %v1313_v62  ;;  %1725 = vlog2.f32 %v3741_v42  ;;  %v1724_v62 = vpop.eup %1723  ;;  %vm1369_vm1 = vcmp.eq.s32.totalorder %v1769_v33, 0 }
 0x1f7   :  { %v1312_v20 = vsub.f32 %v1287_v2, %v712_v15  ;;  %v722_v21 = vmul.f32 0.6931472, %v1724_v62  ;;  %v1770_v62 = vld [vmem:[%s3367_s1 + $0x60] sm:$0xff]  ;;  %v1275_v33 = vmul.f32 0.00019607843, %v3710_v7  ;;  %v1774_v7 = vld [vmem:[%s3367_s1 + $0x98] sm:$0xff] }
 0x1f8   :  { %v1388_v17 = vsel %vm1363_vm8, 0.0, %v1338_v23  ;;  %v3743_v23 = vld [vmem:[#allocation48_spill] sm:$0xff]  ;;  %vm1370_vm2 = vcmp.eq.s32.totalorder %v1770_v62, 0  ;;  %vm1377_vm7 = vcmp.eq.s32.totalorder %v1774_v7, 0 }
 0x1f9   :  { %v1337_v37 = vsub.f32 0.0, %v1312_v20  ;;  %v1418_v35 = vsel %vm1408_vm6, %v1388_v17, 0.0  ;;  %1727 = vlog2.f32 %v3743_v23  ;;  %v3750_v23 = vld [vmem:[#allocation29_spill] sm:$0xff] }
 0x1fa   :  { %1729 = vlog2.f32 %v3744_v57 }
 0x1fb   :  { %v1387_v5 = vsel %vm1362_vm10, 0.0, %v1337_v37  ;;  %v1766_v37 = vld [vmem:[%s3367_s1 + $0x40] sm:$0xff] }
 0x1fc   :  { %v1416_v28 = vsel %vm1408_vm6, %v1387_v5, 0.0  ;;  %v1172_v32 = vpop.xlane.xlu1 %1171  ;;  %vm1366_vm14 = vcmp.eq.s32.totalorder %v1766_v37, 0  ;;  %v1726_v47 = vpop.eup %1725 }
 0x1fd   :  { %v1417_v29 = vadd.f32 %v1416_v28, %v1415_v0  ;;  %v1290_v9 = vsub.f32 %v1172_v32, %v1265_v8  ;;  %v3742_v0 = vld [vmem:[#allocation79_spill] sm:$0xff]  ;;  %v1767_v32 = vld [vmem:[%s3367_s1 + $0x48] sm:$0xff] }
 0x1fe   :  { %v1167_v6 = vpop.xlane.xlu0 %1166  ;;  %v1267_v49 = vmul.f32 0.00019607843, %v3742_v0  ;;  %vm1367_vm15 = vcmp.eq.s32.totalorder %v1767_v32, 0 }
 0x1ff   :  { %v1315_v27 = vsub.f32 %v1290_v9, %v718_v39  ;;  %v1419_v40 = vadd.f32 %v1418_v35, %v1417_v29  ;;  %v1289_v53 = vsub.f32 %v1167_v6, %v1264_v30  ;;  %v3745_v29 = vld [vmem:[#allocation17_spill] sm:$0xff] }
 0x200   :  { %v1271_v9 = vmul.f32 0.00019607843, %v3745_v29 }
 0x201   :  { %v1340_v55 = vsub.f32 0.0, %v1315_v27  ;;  %v1314_v1 = vsub.f32 %v1289_v53, %v716_v46  ;;  %v1728_v46 = vpop.eup %1727  ;;  %v730_v27 = vmul.f32 0.6931472, %v1726_v47 }
 0x202   :  { %v1730_v12 = vpop.eup %1729 }
 0x203   :  { %v1390_v51 = vsel %vm1365_vm11, 0.0, %v1340_v55  ;;  %v1339_v41 = vsub.f32 0.0, %v1314_v1 }
 0x204   :  { %v1187_v3 = vpop.xlane.xlu1 %1186  ;;  %v1422_v61 = vsel %vm1408_vm6, %v1390_v51, 0.0  ;;  %v726_v51 = vmul.f32 0.6931472, %v1728_v46 }
 0x205   :  { %v1389_v48 = vsel %vm1364_vm12, 0.0, %v1339_v41  ;;  %v1293_v63 = vsub.f32 %v1187_v3, %v1268_v25  ;;  %v3746_v25 = vld [vmem:[#allocation83_spill] sm:$0xff] }
 0x206   :  { %v1420_v11 = vsel %vm1408_vm6, %v1389_v48, 0.0  ;;  %1731 = vlog2.f32 %v3746_v25  ;;  %v3747_v48 = vld [vmem:[#allocation12_spill] sm:$0xff]  ;;  %v1773_v25 = vld [vmem:[%s3367_s1 + $0x78] sm:$0xff] }
 0x207   :  { %v1421_v60 = vadd.f32 %v1420_v11, %v1419_v40  ;;  %v1318_v13 = vsub.f32 %v1293_v63, %v724_v31  ;;  %v1270_v34 = vmul.f32 0.00019607843, %v3747_v48  ;;  %v3748_v63 = vld [vmem:[#allocation51_spill] sm:$0xff]  ;;  %vm1373_vm4 = vcmp.eq.s32.totalorder %v1773_v25, 0 }
 0x208   :  { %v1177_v18 = vpop.xlane.xlu2 %1176  ;;  %1733 = vlog2.f32 %v3748_v63 }
 0x209   :  { %v1291_v26 = vsub.f32 %v1177_v18, %v1266_v50  ;;  %v1423_v15 = vadd.f32 %v1422_v61, %v1421_v60  ;;  %v1343_v2 = vsub.f32 0.0, %v1318_v13  ;;  %v728_v50 = vmul.f32 0.6931472, %v1730_v12  ;;  %v3749_v61 = vld [vmem:[#allocation87_spill] sm:$0xff] }
 0x20a   :  { %1735 = vlog2.f32 %v3749_v61 }
 0x20b   :  { %v1316_v20 = vsub.f32 %v1291_v26, %v720_v10  ;;  %v1393_v54 = vsel %vm1368_vm13, 0.0, %v1343_v2  ;;  %v1182_v17 = vpop.xlane.xlu0 %1181 }
 0x20c   :  { %v1292_v5 = vsub.f32 %v1182_v17, %v1267_v49  ;;  %v1428_v3 = vsel %vm1408_vm6, %v1393_v54, 0.0  ;;  %v1732_v26 = vpop.eup %1731  ;;  %v3751_v17 = vld [vmem:[#allocation9_spill] sm:$0xff] }
 0x20d   :  { %v1341_v8 = vsub.f32 0.0, %v1316_v20  ;;  %v1274_v20 = vmul.f32 0.00019607843, %v3750_v23  ;;  %v1272_v37 = vmul.f32 0.00019607843, %v3751_v17  ;;  %v1775_v17 = vld [vmem:[%s3367_s1 + $0x88] sm:$0xff] }
 0x20e   :  { %v1317_v28 = vsub.f32 %v1292_v5, %v722_v21  ;;  %v1734_v0 = vpop.eup %1733  ;;  %v736_v5 = vmul.f32 0.6931472, %v1732_v26  ;;  %vm1375_vm9 = vcmp.eq.s32.totalorder %v1775_v17, 0  ;;  %v1780_v17 = vld [vmem:[%s3367_s1 + $0xc0] sm:$0xff] }
 0x20f   :  { %v1391_v39 = vsel %vm1366_vm14, 0.0, %v1341_v8  ;;  %v732_v32 = vmul.f32 0.6931472, %v1734_v0  ;;  %vm1382_vm13 = vcmp.eq.s32.totalorder %v1780_v17, 0 }
 0x210   :  { %v1424_v30 = vsel %vm1408_vm6, %v1391_v39, 0.0  ;;  %v1342_v35 = vsub.f32 0.0, %v1317_v28  ;;  %v1202_v6 = vpop.xlane.xlu1 %1201  ;;  %v1736_v28 = vpop.eup %1735 }
 0x211   :  { %v1425_v40 = vadd.f32 %v1424_v30, %v1423_v15  ;;  %v1296_v53 = vsub.f32 %v1202_v6, %v1271_v9  ;;  %v3752_v9 = vld [vmem:[#allocation86_spill] sm:$0xff]  ;;  %v3753_v6 = vld [vmem:[#allocation23_spill] sm:$0xff] }
 0x212   :  { %v1392_v45 = vsel %vm1367_vm15, 0.0, %v1342_v35  ;;  %1737 = vlog2.f32 %v3752_v9  ;;  %v1273_v46 = vmul.f32 0.00019607843, %v3753_v6  ;;  %v3758_v9 = vld [vmem:[#allocation89_spill] sm:$0xff] }
 0x213   :  { %v1426_v55 = vsel %vm1408_vm6, %v1392_v45, 0.0  ;;  %v1192_v1 = vpop.xlane.xlu2 %1191  ;;  %v1321_v59 = vsub.f32 %v1296_v53, %v730_v27  ;;  %v1771_v27 = vld [vmem:[%s3367_s1 + $0x80] sm:$0xff] }
 0x214   :  { %v1427_v41 = vadd.f32 %v1426_v55, %v1425_v40  ;;  %v1294_v24 = vsub.f32 %v1192_v1, %v1269_v19  ;;  %vm1374_vm3 = vcmp.eq.s32.totalorder %v1771_v27, 0  ;;  %v3754_v40 = vld [vmem:[#allocation85_spill] sm:$0xff]  ;;  %v734_v1 = vmul.f32 0.6931472, %v1736_v28 }
 0x215   :  { %v1346_v31 = vsub.f32 0.0, %v1321_v59  ;;  %1739 = vlog2.f32 %v3754_v40  ;;  %v1772_v55 = vld [vmem:[%s3367_s1 + $0x70] sm:$0xff] }
 0x216   :  { %v1319_v44 = vsub.f32 %v1294_v24, %v726_v51  ;;  %v1429_v11 = vadd.f32 %v1428_v3, %v1427_v41  ;;  %vm1372_vm5 = vcmp.eq.s32.totalorder %v1772_v55, 0  ;;  %v3755_v51 = vld [vmem:[#allocation90_spill] sm:$0xff]  ;;  %v1776_v28 = vld [vmem:[%s3367_s1 + $0x90] sm:$0xff] }
 0x217   :  { %v1197_v60 = vpop.xlane.xlu0 %1196  ;;  %v1396_v13 = vsel %vm1371_vm0, 0.0, %v1346_v31  ;;  %1741 = vlog2.f32 %v3755_v51  ;;  %vm1376_vm8 = vcmp.eq.s32.totalorder %v1776_v28, 0  ;;  %v1777_v51 = vld [vmem:[%s3367_s1 + $0xa0] sm:$0xff]  ;;  %vm1470_vm0 = vcmp.eq.s32.totalorder %v2661_v58, 0 }
 0x218   :  { %v1295_v38 = vsub.f32 %v1197_v60, %v1270_v34  ;;  %v1344_v42 = vsub.f32 0.0, %v1319_v44  ;;  %v1434_v30 = vsel %vm1408_vm6, %v1396_v13, 0.0  ;;  %v1738_v31 = vpop.eup %1737  ;;  %v3756_v13 = vld [vmem:[#allocation88_spill] sm:$0xff]  ;;  %vm1378_vm10 = vcmp.eq.s32.totalorder %v1777_v51, 0 }
 0x219   :  { %1743 = vlog2.f32 %v3756_v13 }
 0x21a   :  { %v1320_v18 = vsub.f32 %v1295_v38, %v728_v50  ;;  %v1394_v10 = vsel %vm1369_vm1, 0.0, %v1344_v42  ;;  %v742_v38 = vmul.f32 0.6931472, %v1738_v31  ;;  %v1778_v31 = vld [vmem:[%s3367_s1 + $0xa8] sm:$0xff] }
 0x21b   :  { %v1430_v15 = vsel %vm1408_vm6, %v1394_v10, 0.0  ;;  %v1740_v63 = vpop.eup %1739  ;;  %vm1379_vm11 = vcmp.eq.s32.totalorder %v1778_v31, 0 }
 0x21c   :  { %v1345_v2 = vsub.f32 0.0, %v1320_v18  ;;  %v1431_v49 = vadd.f32 %v1430_v15, %v1429_v11  ;;  %v1277_v11 = vmul.f32 0.00019607843, %v2493_v22  ;;  %v738_v10 = vmul.f32 0.6931472, %v1740_v63 }
 0x21d   :  { %v1742_v62 = vpop.eup %1741 }
 0x21e   :  { %v1395_v54 = vsel %vm1370_vm2, 0.0, %v1345_v2  ;;  %v1217_v21 = vpop.xlane.xlu1 %1216  ;;  %v3757_v2 = vld [vmem:[#allocation67_spill] sm:$0xff] }
 0x21f   :  { %v1432_v8 = vsel %vm1408_vm6, %v1395_v54, 0.0  ;;  %v1207_v47 = vpop.xlane.xlu2 %1206  ;;  %v1299_v57 = vsub.f32 %v1217_v21, %v1274_v20  ;;  %1745 = vlog2.f32 %v3757_v2 }
 0x220   :  { %v1433_v39 = vadd.f32 %v1432_v8, %v1431_v49  ;;  %v1297_v29 = vsub.f32 %v1207_v47, %v1272_v37  ;;  %v1276_v49 = vmul.f32 0.00019607843, %v3713_v14  ;;  %v740_v37 = vmul.f32 0.6931472, %v1742_v62  ;;  %v1744_v47 = vpop.eup %1743 }
 0x221   :  { %v1324_v35 = vsub.f32 %v1299_v57, %v736_v5  ;;  %1747 = vlog2.f32 %v3758_v9 }
 0x222   :  { %v1322_v53 = vsub.f32 %v1297_v29, %v732_v32  ;;  %v1435_v45 = vadd.f32 %v1434_v30, %v1433_v39  ;;  %v1212_v19 = vpop.xlane.xlu0 %1211  ;;  %v1278_v39 = vmul.f32 0.00019607843, %v3716_v4 }
 0x223   :  { %v1349_v59 = vsub.f32 0.0, %v1324_v35  ;;  %v1298_v12 = vsub.f32 %v1212_v19, %v1273_v46  ;;  %v744_v46 = vmul.f32 0.6931472, %v1744_v47 }
 0x224   :  { %v1347_v16 = vsub.f32 0.0, %v1322_v53  ;;  %v1279_v53 = vmul.f32 0.00019607843, %v2522_v43 }
 0x225   :  { %v1399_v41 = vsel %vm1374_vm3, 0.0, %v1349_v59  ;;  %v1323_v24 = vsub.f32 %v1298_v12, %v734_v1  ;;  %v1746_v29 = vpop.eup %1745 }
 0x226   :  { %v1397_v3 = vsel %vm1372_vm5, 0.0, %v1347_v16  ;;  %v1440_v0 = vsel %vm1408_vm6, %v1399_v41, 0.0  ;;  %v746_v1 = vmul.f32 0.6931472, %v1746_v29 }
 0x227   :  { %v1436_v48 = vsel %vm1408_vm6, %v1397_v3, 0.0  ;;  %v1348_v34 = vsub.f32 0.0, %v1323_v24  ;;  %v1748_v3 = vpop.eup %1747 }
 0x228   :  { %v1437_v44 = vadd.f32 %v1436_v48, %v1435_v45  ;;  %v3759_v45 = vld [vmem:[#allocation91_spill] sm:$0xff]  ;;  %v748_v13 = vmul.f32 0.6931472, %v1748_v3 }
 0x229   :  { %v1398_v60 = vsel %vm1373_vm4, 0.0, %v1348_v34  ;;  %v1232_v50 = vpop.xlane.xlu1 %1231  ;;  %1749 = vlog2.f32 %v3759_v45 }
 0x22a   :  { %v1438_v42 = vsel %vm1408_vm6, %v1398_v60, 0.0  ;;  %v1302_v18 = vsub.f32 %v1232_v50, %v1277_v11  ;;  %v1282_v50 = vmul.f32 0.00019607843, %v2727_v56 }
 0x22b   :  { %v1222_v61 = vpop.xlane.xlu2 %1221  ;;  %v1439_v26 = vadd.f32 %v1438_v42, %v1437_v44  ;;  %v1280_v44 = vmul.f32 0.00019607843, %v2539_v36 }
 0x22c   :  { %v1300_v15 = vsub.f32 %v1222_v61, %v1275_v33  ;;  %v1327_v22 = vsub.f32 %v1302_v18, %v742_v38 }
 0x22d   :  { %v1441_v20 = vadd.f32 %v1440_v0, %v1439_v26  ;;  %v1281_v26 = vmul.f32 0.00019607843, %v2507_v52  ;;  %v1781_v52 = vld [vmem:[%s3367_s1 + $0xb8] sm:$0xff] }
 0x22e   :  { %v1325_v23 = vsub.f32 %v1300_v15, %v738_v10  ;;  %v1227_v54 = vpop.xlane.xlu0 %1226  ;;  %v1352_v21 = vsub.f32 0.0, %v1327_v22  ;;  %vm1381_vm14 = vcmp.eq.s32.totalorder %v1781_v52, 0 }
 0x22f   :  { %v1301_v5 = vsub.f32 %v1227_v54, %v1276_v49  ;;  %v1750_v11 = vpop.eup %1749  ;;  %v1779_v49 = vld [vmem:[%s3367_s1 + $0xb0] sm:$0xff]  ;;  %s1839_s1 = smov [#allocation5]  }
 0x230   :  { %v1350_v8 = vsub.f32 0.0, %v1325_v23  ;;  %v1402_v57 = vsel %vm1377_vm7, 0.0, %v1352_v21  ;;  %vm1380_vm12 = vcmp.eq.s32.totalorder %v1779_v49, 0  ;;  %v750_v56 = vmul.f32 0.6931472, %v1750_v11  ;;  %s1480_s28 = sshll.u32 %s1839_s1, 4  ;;  %s1481_s28 = int_to_ptr.vmem [resolvable:$true] %s1480_s28 }
 0x231   :  { %v1326_v14 = vsub.f32 %v1301_v5, %v740_v37  ;;  %v1446_v24 = vsel %vm1408_vm6, %v1402_v57, 0.0 }
 0x232   :  { %v1400_v32 = vsel %vm1375_vm9, 0.0, %v1350_v8 }
 0x233   :  { %v1442_v30 = vsel %vm1408_vm6, %v1400_v32, 0.0  ;;  %v1351_v35 = vsub.f32 0.0, %v1326_v14  ;;  %v1237_v6 = vpop.xlane.xlu2 %1236 }
 0x234   :  { %v1443_v27 = vadd.f32 %v1442_v30, %v1441_v20  ;;  %v1303_v40 = vsub.f32 %v1237_v6, %v1278_v39 }
 0x235   :  { %v1401_v19 = vsel %vm1376_vm8, 0.0, %v1351_v35  ;;  %v1242_v55 = vpop.xlane.xlu1 %1241 }
 0x236   :  { %v1444_v59 = vsel %vm1408_vm6, %v1401_v19, 0.0  ;;  %v1328_v4 = vsub.f32 %v1303_v40, %v744_v46  ;;  %v1304_v12 = vsub.f32 %v1242_v55, %v1279_v53  ;;  %v702_v16 = vpop.xlane.xlu0 %701  ;;  %v3760_v53 = vlaneseq }
 0x237   :  { %v1445_v41 = vadd.f32 %v1444_v59, %v1443_v27  ;;  %1751 = vlog2.f32 %v702_v16 }
 0x238   :  { %v1353_v43 = vsub.f32 0.0, %v1328_v4  ;;  %v1329_v25 = vsub.f32 %v1304_v12, %v746_v1  ;;  %v1468_v45 = vshrl.u32 %v3760_v53, 7 }
 0x239   :  { %v1447_v48 = vadd.f32 %v1446_v24, %v1445_v41 }
 0x23a   :  { %v1403_v34 = vsel %vm1378_vm10, 0.0, %v1353_v43  ;;  %v1354_v63 = vsub.f32 0.0, %v1329_v25  ;;  %vm1469_vm15 = vcmp.eq.s32.totalorder %v1468_v45, 0 }
 0x23b   :  { %v1448_v60 = vsel %vm1408_vm6, %v1403_v34, 0.0  ;;  %v1247_v33 = vpop.xlane.xlu2 %1246 }
 0x23c   :  { %v1449_v38 = vadd.f32 %v1448_v60, %v1447_v48  ;;  %v1404_v42 = vsel %vm1379_vm11, 0.0, %v1354_v63  ;;  %v1305_v61 = vsub.f32 %v1247_v33, %v1280_v44 }
 0x23d   :  { %v1752_v18 = vpop.eup %1751  ;;  %v1450_v62 = vsel %vm1408_vm6, %v1404_v42, 0.0  ;;  %v1257_v10 = vpop.xlane.xlu1 %1256 }
 0x23e   :  { %v1451_v15 = vadd.f32 %v1450_v62, %v1449_v38  ;;  %v752_v2 = vmul.f32 0.6931472, %v1752_v18  ;;  %v1330_v0 = vsub.f32 %v1305_v61, %v748_v13  ;;  %v1307_v36 = vsub.f32 %v1257_v10, %v1282_v50  ;;  %v1252_v22 = vpop.xlane.xlu0 %1251 }
 0x23f   :  { %v1306_v7 = vsub.f32 %v1252_v22, %v1281_v26 }
 0x240   :  { %v1355_v23 = vsub.f32 0.0, %v1330_v0  ;;  %v1332_v20 = vsub.f32 %v1307_v36, %v752_v2 }
 0x241   :  { %v1331_v54 = vsub.f32 %v1306_v7, %v750_v56 }
 0x242   :  { %v1405_v37 = vsel %vm1380_vm12, 0.0, %v1355_v23  ;;  %v1357_v21 = vsub.f32 0.0, %v1332_v20 }
 0x243   :  { %v1452_v5 = vsel %vm1408_vm6, %v1405_v37, 0.0  ;;  %v1356_v8 = vsub.f32 0.0, %v1331_v54 }
 0x244   :  { %v1453_v47 = vadd.f32 %v1452_v5, %v1451_v15  ;;  %v1407_v14 = vsel %vm1382_vm13, 0.0, %v1357_v21 }
 0x245   :  { %v1406_v57 = vsel %vm1381_vm14, 0.0, %v1356_v8  ;;  %v1456_v39 = vsel %vm1408_vm6, %v1407_v14, 0.0 }
 0x246   :  { %v1454_v28 = vsel %vm1408_vm6, %v1406_v57, 0.0  ;;  %vm1471_vm6 = vmand %vm1469_vm15, %vm1470_vm0 }
 0x247   :  { %v1455_v32 = vadd.f32 %v1454_v28, %v1453_v47 }
 0x249   :  { %v1457_v29 = vadd.f32 %v1456_v39, %v1455_v32 }
 0x24b   :  { %1458 = vadd.xlane.f32.xlu2 %v1457_v29 }
 0x2be   :  { %v1459_v9 = vpop.xlane.xlu2 %1458 }
 0x2bf   :  { %v1460_v30 = vrot.slane %v1459_v9, 4 }
 0x2c1   :  { %v1461_v35 = vadd.f32 %v1460_v30, %v1459_v9 }
 0x2c3   :  { %v1462_v6 = vrot.slane %v1461_v35, 2 }
 0x2c5   :  { %v1463_v46 = vadd.f32 %v1462_v6, %v1461_v35 }
 0x2c7   :  { %v1464_v27 = vrot.slane %v1463_v46, 1 }
 0x2c9   :  { %v1465_v40 = vadd.f32 %v1464_v27, %v1463_v46 }
 0x2cb   :  { %1492 = vpush %v1465_v40 }
 0x2fc   :  { %s1493_s4 = spop %1492 }
 0x2fd   :  { %v1472_v19 = vstv %s1493_s4 }
 0x2fe   :  { %v1473_v55 = vsel %vm1471_vm6, %v1472_v19, 0.0 }
 0x2ff   :  { %1474 = vst [vmem:[#allocation5] sm:$0xff] %v1473_v55 }
 0x300   :  { %1485 = dma.vmem_to_hbm [thread:$0]  %s1481_s28, 128, %s1483_s3, [#allocation4]  }
 0x301   :  { %1832 = dma.done.wait [#allocation4], 128  }
 0x302   :  { %1833 = vsyncadd [#allocation4], 4294967168 }
 0x303   :  { %1490 = vsyncpa [#allocation3], 1 }
 0x304   :  { %1491 = vsyncpa [#allocation4], 1 }

</bundles_post_ra>
